<compile_context>
chip_gen: v7x
topology: tpu7x:2x2x1
jax: 0.10.0
libtpu: 0.0.40
codegen_flags: <defaults>
</compile_context>

<pallas_src>
import functools
import math

import jax
import jax.numpy as jnp
from jax import lax
from jax.experimental import pallas as pl
from jax.experimental.pallas import tpu as pltpu


# ----------------------------------------------------------------------------
# Fused decoder-layer kernel (one grid step = one batch element, all heads)
# ----------------------------------------------------------------------------
def _decoder_layer_kernel(
        x_ref, mem_ref,
        wqkv_s_ref, bqkv_s_ref, wo_s_ref, bo_s_ref, ln1_g_ref, ln1_b_ref,
        wq_c_ref, bq_c_ref, wkv_c_ref, bkv_c_ref, wo_c_ref, bo_c_ref,
        ln2_g_ref, ln2_b_ref,
        w1_ref, b1_ref, w2_ref, b2_ref, ln3_g_ref, ln3_b_ref,
        out_ref,
        *, num_heads, eps):
    Lq = out_ref.shape[1]
    C = out_ref.shape[-1]
    dh = C // num_heads
    bf16 = jnp.bfloat16

    x32 = x_ref[0].astype(jnp.float32)     # (Lq, C) residual stream, fp32
    mem_b = mem_ref[0].astype(bf16)        # (Lk, C) bf16 operand for the MXU

    def layer_norm(y, g_ref, b_ref):       # fp32 statistics
        mu = jnp.mean(y, axis=-1, keepdims=True)
        yc = y - mu
        var = jnp.mean(yc * yc, axis=-1, keepdims=True)
        return yc * lax.rsqrt(var + eps) * g_ref[...] + b_ref[...]

    def mha(q_all, k_all, v_all, wo_ref, bo_ref):
        # q_all/k_all/v_all: bf16 (L, C). 1/sqrt(dh) is already folded into the
        # Q projection weights (parameter-prep time), so no per-head scaling.
        ohs = []
        for h in range(num_heads):
            lo = h * dh
            qh = q_all[:, lo:lo + dh]                          # (Lq, dh) bf16
            kh = k_all[:, lo:lo + dh]                          # (Lk, dh) bf16
            vh = v_all[:, lo:lo + dh]                          # (Lk, dh) bf16
            # scores: contract the last dims directly (no explicit k transpose)
            s = lax.dot_general(qh, kh, (((1,), (1,)), ((), ())),
                                preferred_element_type=jnp.float32)  # (Lq, Lk)
            s = s - jnp.max(s, axis=-1, keepdims=True)
            p = jnp.exp(s)
            # exact normalization (review correctness note on approx reciprocal)
            p = p * pl.reciprocal(jnp.sum(p, axis=-1, keepdims=True),
                                  approx=False)
            ohs.append(jnp.dot(p.astype(bf16), vh,
                               preferred_element_type=jnp.float32))  # (Lq, dh)
        # Single full-K output projection on the concatenated head outputs.
        o = jnp.concatenate(ohs, axis=-1).astype(bf16)          # (Lq, C)
        return (jnp.dot(o, wo_ref[...], preferred_element_type=jnp.float32)
                + bo_ref[...])

    # ---- self-attention (fused QKV projection, bf16 operands) + res + LN1 ----
    qkv = (jnp.dot(x32.astype(bf16), wqkv_s_ref[...],
                   preferred_element_type=jnp.float32)
           + bqkv_s_ref[...])                                   # (Lq, 3C) f32
    qkv_b = qkv.astype(bf16)
    attn = mha(qkv_b[:, :C], qkv_b[:, C:2 * C], qkv_b[:, 2 * C:],
               wo_s_ref, bo_s_ref)
    x32 = layer_norm(x32 + attn, ln1_g_ref, ln1_b_ref)

    # ---- cross-attention on memory (fused KV projection) + res + LN2 ----
    q_c = (jnp.dot(x32.astype(bf16), wq_c_ref[...],
                   preferred_element_type=jnp.float32)
           + bq_c_ref[...])                                     # (Lq, C) f32
    kv = (jnp.dot(mem_b, wkv_c_ref[...],
                  preferred_element_type=jnp.float32)
          + bkv_c_ref[...])                                     # (Lk, 2C) f32
    kv_b = kv.astype(bf16)
    attn = mha(q_c.astype(bf16), kv_b[:, :C], kv_b[:, C:], wo_c_ref, bo_c_ref)
    x32 = layer_norm(x32 + attn, ln2_g_ref, ln2_b_ref)

    # ---- FFN + residual + LN3, row-chunked over Lq (no full (Lq,F) temp) ----
    row_block = min(Lq, 256)
    for r0 in range(0, Lq, row_block):
        r1 = min(r0 + row_block, Lq)
        xr = x32[r0:r1]                                         # (rows, C) f32
        h = jnp.maximum(
            jnp.dot(xr.astype(bf16), w1_ref[...],
                    preferred_element_type=jnp.float32) + b1_ref[...],
            0.0)                                                # (rows, F) f32
        y = (jnp.dot(h.astype(bf16), w2_ref[...],
                     preferred_element_type=jnp.float32) + b2_ref[...])
        out_ref[0, r0:r1, :] = layer_norm(
            xr + y, ln3_g_ref, ln3_b_ref).astype(out_ref.dtype)


# ----------------------------------------------------------------------------
# Wrapper
# ----------------------------------------------------------------------------
def transformer_decoder_layer_without_pos(params, query, memory,
                                          reference_points, valid_ratios):
    # Explicit compute of the PyTorch forward: reference-point rescaling.
    # Plain JAX (a dedicated kernel with a 2/4-wide lane dim is pure overhead).
    if reference_points.shape[-1] == 4:
        vr = jnp.concatenate([valid_ratios, valid_ratios], axis=-1)
    else:
        assert reference_points.shape[-1] == 2
        vr = valid_ratios
    reference_points_input = reference_points[:, :, None, :] * vr[:, None, :, :]

    Lq, B, C = query.shape
    Lk = memory.shape[0]
    H = params["num_heads"]
    assert C % H == 0

    # Batch-major views so each grid step gets one (Lq, C)/(Lk, C) slab.
    # (See layout note at the top of the file for why the transposes remain.)
    x_b = jnp.transpose(query, (1, 0, 2))    # (B, Lq, C)
    m_b = jnp.transpose(memory, (1, 0, 2))   # (B, Lk, C)

    bf16 = jnp.bfloat16

    def _row(v):   # biases / LN params as fp32 (1, N) rows (post-accum adds)
        return v.reshape(1, -1).astype(jnp.float32)

    def _mat(w):   # matmul operands bf16 (MXU-native); constant-folded under jit
        return w.astype(bf16)

    weights = (
        _mat(params["self_wqkv"]), _row(params["self_bqkv"]),
        _mat(params["self_wo"]), _row(params["self_bo"]),
        _row(params["ln1_g"]), _row(params["ln1_b"]),
        _mat(params["cross_wq"]), _row(params["cross_bq"]),
        _mat(params["cross_wkv"]), _row(params["cross_bkv"]),
        _mat(params["cross_wo"]), _row(params["cross_bo"]),
        _row(params["ln2_g"]), _row(params["ln2_b"]),
        _mat(params["ffn_w1"]), _row(params["ffn_b1"]),
        _mat(params["ffn_w2"]), _row(params["ffn_b2"]),
        _row(params["ln3_g"]), _row(params["ln3_b"]),
    )

    def _const_spec(shape):
        n = len(shape)
        return pl.BlockSpec(shape, lambda b, _n=n: (0,) * _n)  # resident weights

    out = pl.pallas_call(
        functools.partial(_decoder_layer_kernel, num_heads=H, eps=1e-5),
        out_shape=jax.ShapeDtypeStruct((B, Lq, C), query.dtype),
        grid=(B,),
        in_specs=[pl.BlockSpec((1, Lq, C), lambda b: (b, 0, 0)),
                  pl.BlockSpec((1, Lk, C), lambda b: (b, 0, 0))]
                 + [_const_spec(w.shape) for w in weights],
        out_specs=pl.BlockSpec((1, Lq, C), lambda b: (b, 0, 0)),
        compiler_params=pltpu.CompilerParams(
            dimension_semantics=("parallel",),
            vmem_limit_bytes=48 * 1024 * 1024),
    )(x_b, m_b, *weights)

    # TODO(synk): a config with MultiScaleDeformableAttention would consume
    # reference_points_input via multi-level bilinear sampling; standard MHA
    # cross-attention is implemented here (reference_points_input is returned).
    return jnp.transpose(out, (1, 0, 2)), reference_points_input


# ----------------------------------------------------------------------------
# Deterministic parameter init (xavier_uniform matrices, zeros/ones otherwise).
# The 1/sqrt(dh) attention scale is folded into the Q projections HERE (one-time
# parameter prep), so the kernel never multiplies by the scale.
# ----------------------------------------------------------------------------
def init_params(key, C, num_heads, ffn_dim):
    keys = jax.random.split(key, 10)

    def xavier(k, shape):
        fan_in, fan_out = shape
        lim = math.sqrt(6.0 / (fan_in + fan_out))
        return jax.random.uniform(k, shape, jnp.float32, -lim, lim)

    scale = 1.0 / math.sqrt(C // num_heads)

    return {
        "num_heads": num_heads,
        # self-attention: fused QKV projection (Q columns pre-scaled) + out proj
        "self_wqkv": jnp.concatenate(
            [xavier(keys[0], (C, C)) * scale,
             xavier(keys[1], (C, C)),
             xavier(keys[2], (C, C))], axis=1),
        "self_bqkv": jnp.zeros((3 * C,), jnp.float32),  # q-bias scale: 0 * s = 0
        "self_wo": xavier(keys[3], (C, C)),
        "self_bo": jnp.zeros((C,), jnp.float32),
        # cross-attention: Q from query (pre-scaled), fused KV from memory
        "cross_wq": xavier(keys[4], (C, C)) * scale,
        "cross_bq": jnp.zeros((C,), jnp.float32),
        "cross_wkv": jnp.concatenate(
            [xavier(keys[5], (C, C)), xavier(keys[6], (C, C))], axis=1),
        "cross_bkv": jnp.zeros((2 * C,), jnp.float32),
        "cross_wo": xavier(keys[7], (C, C)),
        "cross_bo": jnp.zeros((C,), jnp.float32),
        # FFN
        "ffn_w1": xavier(keys[8], (C, ffn_dim)),
        "ffn_b1": jnp.zeros((ffn_dim,), jnp.float32),
        "ffn_w2": xavier(keys[9], (ffn_dim, C)),
        "ffn_b2": jnp.zeros((C,), jnp.float32),
        # LayerNorms
        "ln1_g": jnp.ones((C,), jnp.float32), "ln1_b": jnp.zeros((C,), jnp.float32),
        "ln2_g": jnp.ones((C,), jnp.float32), "ln2_b": jnp.zeros((C,), jnp.float32),
        "ln3_g": jnp.ones((C,), jnp.float32), "ln3_b": jnp.zeros((C,), jnp.float32),
    }


if __name__ == "__main__":
    # NOTE: production configs should use C / dh as multiples of 128 and
    # Lq / Lk as multiples of 8 (or pad in the wrapper); these demo shapes are
    # intentionally tiny.
    key = jax.random.PRNGKey(0)
    B, Lq, Lk, C, H, F, nl = 2, 8, 16, 32, 4, 64, 4
    k1, k2, k3, k4, k5 = jax.random.split(key, 5)

    query = jax.random.normal(k1, (Lq, B, C), jnp.float32)
    memory = jax.random.normal(k2, (Lk, B, C), jnp.float32)
    reference_points = jax.random.uniform(k3, (B, Lq, 2), jnp.float32)
    valid_ratios = jax.random.uniform(k4, (B, nl, 2), jnp.float32,
                                      minval=0.5, maxval=1.0)
    params = init_params(k5, C, H, F)

    # jit the whole forward; params are closed over, so the bf16 weight casts
    # and bias reshapes constant-fold at compile time (no per-call cost).
    fwd = jax.jit(lambda q, m, rp, vr:
                  transformer_decoder_layer_without_pos(params, q, m, rp, vr))
    out, ref_inp = fwd(query, memory, reference_points, valid_ratios)
    jax.block_until_ready((out, ref_inp))

    assert out.shape == (Lq, B, C)
    assert ref_inp.shape == (B, Lq, nl, 2)
    assert bool(jnp.all(jnp.isfinite(out))) and bool(jnp.all(jnp.isfinite(ref_inp)))
    print("KERNEL_OK")
</pallas_src>

<mosaic_0001>
module attributes {stable_mosaic.version = 11 : i64} {
  func.func @_decoder_layer_kernel(%arg0: i32, %arg1: memref<1x8x32xf32, #tpu.memory_space<vmem>>, %arg2: memref<1x16x32xf32, #tpu.memory_space<vmem>>, %arg3: memref<32x96xbf16, #tpu.memory_space<vmem>>, %arg4: memref<1x96xf32, #tpu.memory_space<vmem>>, %arg5: memref<32x32xbf16, #tpu.memory_space<vmem>>, %arg6: memref<1x32xf32, #tpu.memory_space<vmem>>, %arg7: memref<1x32xf32, #tpu.memory_space<vmem>>, %arg8: memref<1x32xf32, #tpu.memory_space<vmem>>, %arg9: memref<32x32xbf16, #tpu.memory_space<vmem>>, %arg10: memref<1x32xf32, #tpu.memory_space<vmem>>, %arg11: memref<32x64xbf16, #tpu.memory_space<vmem>>, %arg12: memref<1x64xf32, #tpu.memory_space<vmem>>, %arg13: memref<32x32xbf16, #tpu.memory_space<vmem>>, %arg14: memref<1x32xf32, #tpu.memory_space<vmem>>, %arg15: memref<1x32xf32, #tpu.memory_space<vmem>>, %arg16: memref<1x32xf32, #tpu.memory_space<vmem>>, %arg17: memref<32x64xbf16, #tpu.memory_space<vmem>>, %arg18: memref<1x64xf32, #tpu.memory_space<vmem>>, %arg19: memref<64x32xbf16, #tpu.memory_space<vmem>>, %arg20: memref<1x32xf32, #tpu.memory_space<vmem>>, %arg21: memref<1x32xf32, #tpu.memory_space<vmem>>, %arg22: memref<1x32xf32, #tpu.memory_space<vmem>>, %arg23: memref<1x8x32xf32, #tpu.memory_space<vmem>>) attributes {dimension_semantics = [#tpu.dimension_semantics<parallel>], iteration_bounds = array<i64: 2>, scalar_prefetch = 0 : i64, scratch_operands = 0 : i64, tpu.core_type = #tpu.core_type<tc>, window_params = [{transform_indices = @transform_0, window_bounds = array<i64: 1, 8, 32>}, {transform_indices = @transform_1, window_bounds = array<i64: 1, 16, 32>}, {pipeline_mode = #tpu.pipeline_mode<synchronous>, transform_indices = @transform_2, window_bounds = array<i64: 32, 96>}, {pipeline_mode = #tpu.pipeline_mode<synchronous>, transform_indices = @transform_3, window_bounds = array<i64: 1, 96>}, {pipeline_mode = #tpu.pipeline_mode<synchronous>, transform_indices = @transform_4, window_bounds = array<i64: 32, 32>}, {pipeline_mode = #tpu.pipeline_mode<synchronous>, transform_indices = @transform_5, window_bounds = array<i64: 1, 32>}, {pipeline_mode = #tpu.pipeline_mode<synchronous>, transform_indices = @transform_6, window_bounds = array<i64: 1, 32>}, {pipeline_mode = #tpu.pipeline_mode<synchronous>, transform_indices = @transform_7, window_bounds = array<i64: 1, 32>}, {pipeline_mode = #tpu.pipeline_mode<synchronous>, transform_indices = @transform_8, window_bounds = array<i64: 32, 32>}, {pipeline_mode = #tpu.pipeline_mode<synchronous>, transform_indices = @transform_9, window_bounds = array<i64: 1, 32>}, {pipeline_mode = #tpu.pipeline_mode<synchronous>, transform_indices = @transform_10, window_bounds = array<i64: 32, 64>}, {pipeline_mode = #tpu.pipeline_mode<synchronous>, transform_indices = @transform_11, window_bounds = array<i64: 1, 64>}, {pipeline_mode = #tpu.pipeline_mode<synchronous>, transform_indices = @transform_12, window_bounds = array<i64: 32, 32>}, {pipeline_mode = #tpu.pipeline_mode<synchronous>, transform_indices = @transform_13, window_bounds = array<i64: 1, 32>}, {pipeline_mode = #tpu.pipeline_mode<synchronous>, transform_indices = @transform_14, window_bounds = array<i64: 1, 32>}, {pipeline_mode = #tpu.pipeline_mode<synchronous>, transform_indices = @transform_15, window_bounds = array<i64: 1, 32>}, {pipeline_mode = #tpu.pipeline_mode<synchronous>, transform_indices = @transform_16, window_bounds = array<i64: 32, 64>}, {pipeline_mode = #tpu.pipeline_mode<synchronous>, transform_indices = @transform_17, window_bounds = array<i64: 1, 64>}, {pipeline_mode = #tpu.pipeline_mode<synchronous>, transform_indices = @transform_18, window_bounds = array<i64: 64, 32>}, {pipeline_mode = #tpu.pipeline_mode<synchronous>, transform_indices = @transform_19, window_bounds = array<i64: 1, 32>}, {pipeline_mode = #tpu.pipeline_mode<synchronous>, transform_indices = @transform_20, window_bounds = array<i64: 1, 32>}, {pipeline_mode = #tpu.pipeline_mode<synchronous>, transform_indices = @transform_21, window_bounds = array<i64: 1, 32>}, {transform_indices = @transform_22, window_bounds = array<i64: 1, 8, 32>}]} {
    %c0 = arith.constant 0 : index
    %c0_0 = arith.constant 0 : index
    %c0_1 = arith.constant 0 : index
    %0 = vector.load %arg1[%c0, %c0_0, %c0_1] : memref<1x8x32xf32, #tpu.memory_space<vmem>>, vector<1x8x32xf32>
    %1 = vector.shape_cast %0 : vector<1x8x32xf32> to vector<8x32xf32>
    %c0_2 = arith.constant 0 : index
    %c0_3 = arith.constant 0 : index
    %c0_4 = arith.constant 0 : index
    %2 = vector.load %arg2[%c0_2, %c0_3, %c0_4] : memref<1x16x32xf32, #tpu.memory_space<vmem>>, vector<1x16x32xf32>
    %3 = vector.shape_cast %2 : vector<1x16x32xf32> to vector<16x32xf32>
    %4 = arith.truncf %3 : vector<16x32xf32> to vector<16x32xbf16>
    %5 = arith.truncf %1 : vector<8x32xf32> to vector<8x32xbf16>
    %c0_5 = arith.constant 0 : index
    %c0_6 = arith.constant 0 : index
    %6 = vector.load %arg3[%c0_5, %c0_6] : memref<32x96xbf16, #tpu.memory_space<vmem>>, vector<32x96xbf16>
    %cst = arith.constant dense<0.000000e+00> : vector<8x96xf32>
    %7 = tpu.matmul %5, %6, %cst {dimension_numbers = #tpu.dot_dimension_numbers<[1], [0], [0], [1], [0, 0, 1, 1], [], []>} : vector<8x32xbf16>, vector<32x96xbf16>, vector<8x96xf32> -> vector<8x96xf32>
    %c0_7 = arith.constant 0 : index
    %c0_8 = arith.constant 0 : index
    %8 = vector.load %arg4[%c0_7, %c0_8] : memref<1x96xf32, #tpu.memory_space<vmem>>, vector<1x96xf32>
    %9 = vector.broadcast %8 : vector<1x96xf32> to vector<8x96xf32>
    %10 = arith.addf %7, %9 : vector<8x96xf32>
    %11 = arith.truncf %10 : vector<8x96xf32> to vector<8x96xbf16>
    %12 = vector.extract_strided_slice %11 {offsets = [0, 0], sizes = [8, 32], strides = [1, 1]} : vector<8x96xbf16> to vector<8x32xbf16>
    %13 = vector.extract_strided_slice %11 {offsets = [0, 32], sizes = [8, 32], strides = [1, 1]} : vector<8x96xbf16> to vector<8x32xbf16>
    %14 = vector.extract_strided_slice %11 {offsets = [0, 64], sizes = [8, 32], strides = [1, 1]} : vector<8x96xbf16> to vector<8x32xbf16>
    %15 = vector.extract_strided_slice %12 {offsets = [0, 0], sizes = [8, 8], strides = [1, 1]} : vector<8x32xbf16> to vector<8x8xbf16>
    %16 = vector.extract_strided_slice %13 {offsets = [0, 0], sizes = [8, 8], strides = [1, 1]} : vector<8x32xbf16> to vector<8x8xbf16>
    %17 = vector.extract_strided_slice %14 {offsets = [0, 0], sizes = [8, 8], strides = [1, 1]} : vector<8x32xbf16> to vector<8x8xbf16>
    %cst_9 = arith.constant dense<0.000000e+00> : vector<8x8xf32>
    %18 = tpu.matmul %15, %16, %cst_9 {dimension_numbers = #tpu.dot_dimension_numbers<[1], [1], [0], [0], [0, 0, 1, 0], [], []>} : vector<8x8xbf16>, vector<8x8xbf16>, vector<8x8xf32> -> vector<8x8xf32>
    %cst_10 = arith.constant dense<0xFF800000> : vector<8xf32>
    %19 = vector.multi_reduction <maximumf>, %18, %cst_10 [1] : vector<8x8xf32> to vector<8xf32>
    %20 = vector.shape_cast %19 : vector<8xf32> to vector<8x1xf32>
    %21 = vector.broadcast %20 : vector<8x1xf32> to vector<8x8xf32>
    %22 = arith.subf %18, %21 : vector<8x8xf32>
    %23 = math.exp %22 : vector<8x8xf32>
    %cst_11 = arith.constant dense<0.000000e+00> : vector<8xf32>
    %24 = vector.multi_reduction <add>, %23, %cst_11 [1] : vector<8x8xf32> to vector<8xf32>
    %25 = vector.shape_cast %24 : vector<8xf32> to vector<8x1xf32>
    %26 = tpu.reciprocal %25 : vector<8x1xf32> -> vector<8x1xf32>
    %27 = vector.broadcast %26 : vector<8x1xf32> to vector<8x8xf32>
    %28 = arith.mulf %23, %27 : vector<8x8xf32>
    %29 = arith.truncf %28 : vector<8x8xf32> to vector<8x8xbf16>
    %cst_12 = arith.constant dense<0.000000e+00> : vector<8x8xf32>
    %30 = tpu.matmul %29, %17, %cst_12 {dimension_numbers = #tpu.dot_dimension_numbers<[1], [0], [0], [1], [0, 0, 1, 1], [], []>} : vector<8x8xbf16>, vector<8x8xbf16>, vector<8x8xf32> -> vector<8x8xf32>
    %31 = vector.extract_strided_slice %12 {offsets = [0, 8], sizes = [8, 8], strides = [1, 1]} : vector<8x32xbf16> to vector<8x8xbf16>
    %32 = vector.extract_strided_slice %13 {offsets = [0, 8], sizes = [8, 8], strides = [1, 1]} : vector<8x32xbf16> to vector<8x8xbf16>
    %33 = vector.extract_strided_slice %14 {offsets = [0, 8], sizes = [8, 8], strides = [1, 1]} : vector<8x32xbf16> to vector<8x8xbf16>
    %cst_13 = arith.constant dense<0.000000e+00> : vector<8x8xf32>
    %34 = tpu.matmul %31, %32, %cst_13 {dimension_numbers = #tpu.dot_dimension_numbers<[1], [1], [0], [0], [0, 0, 1, 0], [], []>} : vector<8x8xbf16>, vector<8x8xbf16>, vector<8x8xf32> -> vector<8x8xf32>
    %cst_14 = arith.constant dense<0xFF800000> : vector<8xf32>
    %35 = vector.multi_reduction <maximumf>, %34, %cst_14 [1] : vector<8x8xf32> to vector<8xf32>
    %36 = vector.shape_cast %35 : vector<8xf32> to vector<8x1xf32>
    %37 = vector.broadcast %36 : vector<8x1xf32> to vector<8x8xf32>
    %38 = arith.subf %34, %37 : vector<8x8xf32>
    %39 = math.exp %38 : vector<8x8xf32>
    %cst_15 = arith.constant dense<0.000000e+00> : vector<8xf32>
    %40 = vector.multi_reduction <add>, %39, %cst_15 [1] : vector<8x8xf32> to vector<8xf32>
    %41 = vector.shape_cast %40 : vector<8xf32> to vector<8x1xf32>
    %42 = tpu.reciprocal %41 : vector<8x1xf32> -> vector<8x1xf32>
    %43 = vector.broadcast %42 : vector<8x1xf32> to vector<8x8xf32>
    %44 = arith.mulf %39, %43 : vector<8x8xf32>
    %45 = arith.truncf %44 : vector<8x8xf32> to vector<8x8xbf16>
    %cst_16 = arith.constant dense<0.000000e+00> : vector<8x8xf32>
    %46 = tpu.matmul %45, %33, %cst_16 {dimension_numbers = #tpu.dot_dimension_numbers<[1], [0], [0], [1], [0, 0, 1, 1], [], []>} : vector<8x8xbf16>, vector<8x8xbf16>, vector<8x8xf32> -> vector<8x8xf32>
    %47 = vector.extract_strided_slice %12 {offsets = [0, 16], sizes = [8, 8], strides = [1, 1]} : vector<8x32xbf16> to vector<8x8xbf16>
    %48 = vector.extract_strided_slice %13 {offsets = [0, 16], sizes = [8, 8], strides = [1, 1]} : vector<8x32xbf16> to vector<8x8xbf16>
    %49 = vector.extract_strided_slice %14 {offsets = [0, 16], sizes = [8, 8], strides = [1, 1]} : vector<8x32xbf16> to vector<8x8xbf16>
    %cst_17 = arith.constant dense<0.000000e+00> : vector<8x8xf32>
    %50 = tpu.matmul %47, %48, %cst_17 {dimension_numbers = #tpu.dot_dimension_numbers<[1], [1], [0], [0], [0, 0, 1, 0], [], []>} : vector<8x8xbf16>, vector<8x8xbf16>, vector<8x8xf32> -> vector<8x8xf32>
    %cst_18 = arith.constant dense<0xFF800000> : vector<8xf32>
    %51 = vector.multi_reduction <maximumf>, %50, %cst_18 [1] : vector<8x8xf32> to vector<8xf32>
    %52 = vector.shape_cast %51 : vector<8xf32> to vector<8x1xf32>
    %53 = vector.broadcast %52 : vector<8x1xf32> to vector<8x8xf32>
    %54 = arith.subf %50, %53 : vector<8x8xf32>
    %55 = math.exp %54 : vector<8x8xf32>
    %cst_19 = arith.constant dense<0.000000e+00> : vector<8xf32>
    %56 = vector.multi_reduction <add>, %55, %cst_19 [1] : vector<8x8xf32> to vector<8xf32>
    %57 = vector.shape_cast %56 : vector<8xf32> to vector<8x1xf32>
    %58 = tpu.reciprocal %57 : vector<8x1xf32> -> vector<8x1xf32>
    %59 = vector.broadcast %58 : vector<8x1xf32> to vector<8x8xf32>
    %60 = arith.mulf %55, %59 : vector<8x8xf32>
    %61 = arith.truncf %60 : vector<8x8xf32> to vector<8x8xbf16>
    %cst_20 = arith.constant dense<0.000000e+00> : vector<8x8xf32>
    %62 = tpu.matmul %61, %49, %cst_20 {dimension_numbers = #tpu.dot_dimension_numbers<[1], [0], [0], [1], [0, 0, 1, 1], [], []>} : vector<8x8xbf16>, vector<8x8xbf16>, vector<8x8xf32> -> vector<8x8xf32>
    %63 = vector.extract_strided_slice %12 {offsets = [0, 24], sizes = [8, 8], strides = [1, 1]} : vector<8x32xbf16> to vector<8x8xbf16>
    %64 = vector.extract_strided_slice %13 {offsets = [0, 24], sizes = [8, 8], strides = [1, 1]} : vector<8x32xbf16> to vector<8x8xbf16>
    %65 = vector.extract_strided_slice %14 {offsets = [0, 24], sizes = [8, 8], strides = [1, 1]} : vector<8x32xbf16> to vector<8x8xbf16>
    %cst_21 = arith.constant dense<0.000000e+00> : vector<8x8xf32>
    %66 = tpu.matmul %63, %64, %cst_21 {dimension_numbers = #tpu.dot_dimension_numbers<[1], [1], [0], [0], [0, 0, 1, 0], [], []>} : vector<8x8xbf16>, vector<8x8xbf16>, vector<8x8xf32> -> vector<8x8xf32>
    %cst_22 = arith.constant dense<0xFF800000> : vector<8xf32>
    %67 = vector.multi_reduction <maximumf>, %66, %cst_22 [1] : vector<8x8xf32> to vector<8xf32>
    %68 = vector.shape_cast %67 : vector<8xf32> to vector<8x1xf32>
    %69 = vector.broadcast %68 : vector<8x1xf32> to vector<8x8xf32>
    %70 = arith.subf %66, %69 : vector<8x8xf32>
    %71 = math.exp %70 : vector<8x8xf32>
    %cst_23 = arith.constant dense<0.000000e+00> : vector<8xf32>
    %72 = vector.multi_reduction <add>, %71, %cst_23 [1] : vector<8x8xf32> to vector<8xf32>
    %73 = vector.shape_cast %72 : vector<8xf32> to vector<8x1xf32>
    %74 = tpu.reciprocal %73 : vector<8x1xf32> -> vector<8x1xf32>
    %75 = vector.broadcast %74 : vector<8x1xf32> to vector<8x8xf32>
    %76 = arith.mulf %71, %75 : vector<8x8xf32>
    %77 = arith.truncf %76 : vector<8x8xf32> to vector<8x8xbf16>
    %cst_24 = arith.constant dense<0.000000e+00> : vector<8x8xf32>
    %78 = tpu.matmul %77, %65, %cst_24 {dimension_numbers = #tpu.dot_dimension_numbers<[1], [0], [0], [1], [0, 0, 1, 1], [], []>} : vector<8x8xbf16>, vector<8x8xbf16>, vector<8x8xf32> -> vector<8x8xf32>
    %79 = tpu.concatenate %30, %46, %62, %78 in 1 : vector<8x8xf32>, vector<8x8xf32>, vector<8x8xf32>, vector<8x8xf32> -> vector<8x32xf32>
    %80 = arith.truncf %79 : vector<8x32xf32> to vector<8x32xbf16>
    %c0_25 = arith.constant 0 : index
    %c0_26 = arith.constant 0 : index
    %81 = vector.load %arg5[%c0_25, %c0_26] : memref<32x32xbf16, #tpu.memory_space<vmem>>, vector<32x32xbf16>
    %cst_27 = arith.constant dense<0.000000e+00> : vector<8x32xf32>
    %82 = tpu.matmul %80, %81, %cst_27 {dimension_numbers = #tpu.dot_dimension_numbers<[1], [0], [0], [1], [0, 0, 1, 1], [], []>} : vector<8x32xbf16>, vector<32x32xbf16>, vector<8x32xf32> -> vector<8x32xf32>
    %c0_28 = arith.constant 0 : index
    %c0_29 = arith.constant 0 : index
    %83 = vector.load %arg6[%c0_28, %c0_29] : memref<1x32xf32, #tpu.memory_space<vmem>>, vector<1x32xf32>
    %84 = vector.broadcast %83 : vector<1x32xf32> to vector<8x32xf32>
    %85 = arith.addf %82, %84 : vector<8x32xf32>
    %86 = arith.addf %1, %85 : vector<8x32xf32>
    %cst_30 = arith.constant dense<0.000000e+00> : vector<8xf32>
    %87 = vector.multi_reduction <add>, %86, %cst_30 [1] : vector<8x32xf32> to vector<8xf32>
    %88 = vector.shape_cast %87 : vector<8xf32> to vector<8x1xf32>
    %cst_31 = arith.constant 3.200000e+01 : f32
    %89 = vector.broadcast %cst_31 : f32 to vector<8x1xf32>
    %90 = arith.divf %88, %89 : vector<8x1xf32>
    %91 = vector.broadcast %90 : vector<8x1xf32> to vector<8x32xf32>
    %92 = arith.subf %86, %91 : vector<8x32xf32>
    %93 = arith.mulf %92, %92 : vector<8x32xf32>
    %cst_32 = arith.constant dense<0.000000e+00> : vector<8xf32>
    %94 = vector.multi_reduction <add>, %93, %cst_32 [1] : vector<8x32xf32> to vector<8xf32>
    %95 = vector.shape_cast %94 : vector<8xf32> to vector<8x1xf32>
    %cst_33 = arith.constant 3.200000e+01 : f32
    %96 = vector.broadcast %cst_33 : f32 to vector<8x1xf32>
    %97 = arith.divf %95, %96 : vector<8x1xf32>
    %cst_34 = arith.constant 9.99999974E-6 : f32
    %98 = vector.broadcast %cst_34 : f32 to vector<8x1xf32>
    %99 = arith.addf %97, %98 : vector<8x1xf32>
    %100 = math.rsqrt %99 : vector<8x1xf32>
    %101 = vector.broadcast %100 : vector<8x1xf32> to vector<8x32xf32>
    %102 = arith.mulf %92, %101 : vector<8x32xf32>
    %c0_35 = arith.constant 0 : index
    %c0_36 = arith.constant 0 : index
    %103 = vector.load %arg7[%c0_35, %c0_36] : memref<1x32xf32, #tpu.memory_space<vmem>>, vector<1x32xf32>
    %104 = vector.broadcast %103 : vector<1x32xf32> to vector<8x32xf32>
    %105 = arith.mulf %102, %104 : vector<8x32xf32>
    %c0_37 = arith.constant 0 : index
    %c0_38 = arith.constant 0 : index
    %106 = vector.load %arg8[%c0_37, %c0_38] : memref<1x32xf32, #tpu.memory_space<vmem>>, vector<1x32xf32>
    %107 = vector.broadcast %106 : vector<1x32xf32> to vector<8x32xf32>
    %108 = arith.addf %105, %107 : vector<8x32xf32>
    %109 = arith.truncf %108 : vector<8x32xf32> to vector<8x32xbf16>
    %c0_39 = arith.constant 0 : index
    %c0_40 = arith.constant 0 : index
    %110 = vector.load %arg9[%c0_39, %c0_40] : memref<32x32xbf16, #tpu.memory_space<vmem>>, vector<32x32xbf16>
    %cst_41 = arith.constant dense<0.000000e+00> : vector<8x32xf32>
    %111 = tpu.matmul %109, %110, %cst_41 {dimension_numbers = #tpu.dot_dimension_numbers<[1], [0], [0], [1], [0, 0, 1, 1], [], []>} : vector<8x32xbf16>, vector<32x32xbf16>, vector<8x32xf32> -> vector<8x32xf32>
    %c0_42 = arith.constant 0 : index
    %c0_43 = arith.constant 0 : index
    %112 = vector.load %arg10[%c0_42, %c0_43] : memref<1x32xf32, #tpu.memory_space<vmem>>, vector<1x32xf32>
    %113 = vector.broadcast %112 : vector<1x32xf32> to vector<8x32xf32>
    %114 = arith.addf %111, %113 : vector<8x32xf32>
    %c0_44 = arith.constant 0 : index
    %c0_45 = arith.constant 0 : index
    %115 = vector.load %arg11[%c0_44, %c0_45] : memref<32x64xbf16, #tpu.memory_space<vmem>>, vector<32x64xbf16>
    %cst_46 = arith.constant dense<0.000000e+00> : vector<16x64xf32>
    %116 = tpu.matmul %4, %115, %cst_46 {dimension_numbers = #tpu.dot_dimension_numbers<[1], [0], [0], [1], [0, 0, 1, 1], [], []>} : vector<16x32xbf16>, vector<32x64xbf16>, vector<16x64xf32> -> vector<16x64xf32>
    %c0_47 = arith.constant 0 : index
    %c0_48 = arith.constant 0 : index
    %117 = vector.load %arg12[%c0_47, %c0_48] : memref<1x64xf32, #tpu.memory_space<vmem>>, vector<1x64xf32>
    %118 = vector.broadcast %117 : vector<1x64xf32> to vector<16x64xf32>
    %119 = arith.addf %116, %118 : vector<16x64xf32>
    %120 = arith.truncf %119 : vector<16x64xf32> to vector<16x64xbf16>
    %121 = arith.truncf %114 : vector<8x32xf32> to vector<8x32xbf16>
    %122 = vector.extract_strided_slice %120 {offsets = [0, 0], sizes = [16, 32], strides = [1, 1]} : vector<16x64xbf16> to vector<16x32xbf16>
    %123 = vector.extract_strided_slice %120 {offsets = [0, 32], sizes = [16, 32], strides = [1, 1]} : vector<16x64xbf16> to vector<16x32xbf16>
    %124 = vector.extract_strided_slice %121 {offsets = [0, 0], sizes = [8, 8], strides = [1, 1]} : vector<8x32xbf16> to vector<8x8xbf16>
    %125 = vector.extract_strided_slice %122 {offsets = [0, 0], sizes = [16, 8], strides = [1, 1]} : vector<16x32xbf16> to vector<16x8xbf16>
    %126 = vector.extract_strided_slice %123 {offsets = [0, 0], sizes = [16, 8], strides = [1, 1]} : vector<16x32xbf16> to vector<16x8xbf16>
    %cst_49 = arith.constant dense<0.000000e+00> : vector<8x16xf32>
    %127 = tpu.matmul %124, %125, %cst_49 {dimension_numbers = #tpu.dot_dimension_numbers<[1], [1], [0], [0], [0, 0, 1, 0], [], []>} : vector<8x8xbf16>, vector<16x8xbf16>, vector<8x16xf32> -> vector<8x16xf32>
    %cst_50 = arith.constant dense<0xFF800000> : vector<8xf32>
    %128 = vector.multi_reduction <maximumf>, %127, %cst_50 [1] : vector<8x16xf32> to vector<8xf32>
    %129 = vector.shape_cast %128 : vector<8xf32> to vector<8x1xf32>
    %130 = vector.broadcast %129 : vector<8x1xf32> to vector<8x16xf32>
    %131 = arith.subf %127, %130 : vector<8x16xf32>
    %132 = math.exp %131 : vector<8x16xf32>
    %cst_51 = arith.constant dense<0.000000e+00> : vector<8xf32>
    %133 = vector.multi_reduction <add>, %132, %cst_51 [1] : vector<8x16xf32> to vector<8xf32>
    %134 = vector.shape_cast %133 : vector<8xf32> to vector<8x1xf32>
    %135 = tpu.reciprocal %134 : vector<8x1xf32> -> vector<8x1xf32>
    %136 = vector.broadcast %135 : vector<8x1xf32> to vector<8x16xf32>
    %137 = arith.mulf %132, %136 : vector<8x16xf32>
    %138 = arith.truncf %137 : vector<8x16xf32> to vector<8x16xbf16>
    %cst_52 = arith.constant dense<0.000000e+00> : vector<8x8xf32>
    %139 = tpu.matmul %138, %126, %cst_52 {dimension_numbers = #tpu.dot_dimension_numbers<[1], [0], [0], [1], [0, 0, 1, 1], [], []>} : vector<8x16xbf16>, vector<16x8xbf16>, vector<8x8xf32> -> vector<8x8xf32>
    %140 = vector.extract_strided_slice %121 {offsets = [0, 8], sizes = [8, 8], strides = [1, 1]} : vector<8x32xbf16> to vector<8x8xbf16>
    %141 = vector.extract_strided_slice %122 {offsets = [0, 8], sizes = [16, 8], strides = [1, 1]} : vector<16x32xbf16> to vector<16x8xbf16>
    %142 = vector.extract_strided_slice %123 {offsets = [0, 8], sizes = [16, 8], strides = [1, 1]} : vector<16x32xbf16> to vector<16x8xbf16>
    %cst_53 = arith.constant dense<0.000000e+00> : vector<8x16xf32>
    %143 = tpu.matmul %140, %141, %cst_53 {dimension_numbers = #tpu.dot_dimension_numbers<[1], [1], [0], [0], [0, 0, 1, 0], [], []>} : vector<8x8xbf16>, vector<16x8xbf16>, vector<8x16xf32> -> vector<8x16xf32>
    %cst_54 = arith.constant dense<0xFF800000> : vector<8xf32>
    %144 = vector.multi_reduction <maximumf>, %143, %cst_54 [1] : vector<8x16xf32> to vector<8xf32>
    %145 = vector.shape_cast %144 : vector<8xf32> to vector<8x1xf32>
    %146 = vector.broadcast %145 : vector<8x1xf32> to vector<8x16xf32>
    %147 = arith.subf %143, %146 : vector<8x16xf32>
    %148 = math.exp %147 : vector<8x16xf32>
    %cst_55 = arith.constant dense<0.000000e+00> : vector<8xf32>
    %149 = vector.multi_reduction <add>, %148, %cst_55 [1] : vector<8x16xf32> to vector<8xf32>
    %150 = vector.shape_cast %149 : vector<8xf32> to vector<8x1xf32>
    %151 = tpu.reciprocal %150 : vector<8x1xf32> -> vector<8x1xf32>
    %152 = vector.broadcast %151 : vector<8x1xf32> to vector<8x16xf32>
    %153 = arith.mulf %148, %152 : vector<8x16xf32>
    %154 = arith.truncf %153 : vector<8x16xf32> to vector<8x16xbf16>
    %cst_56 = arith.constant dense<0.000000e+00> : vector<8x8xf32>
    %155 = tpu.matmul %154, %142, %cst_56 {dimension_numbers = #tpu.dot_dimension_numbers<[1], [0], [0], [1], [0, 0, 1, 1], [], []>} : vector<8x16xbf16>, vector<16x8xbf16>, vector<8x8xf32> -> vector<8x8xf32>
    %156 = vector.extract_strided_slice %121 {offsets = [0, 16], sizes = [8, 8], strides = [1, 1]} : vector<8x32xbf16> to vector<8x8xbf16>
    %157 = vector.extract_strided_slice %122 {offsets = [0, 16], sizes = [16, 8], strides = [1, 1]} : vector<16x32xbf16> to vector<16x8xbf16>
    %158 = vector.extract_strided_slice %123 {offsets = [0, 16], sizes = [16, 8], strides = [1, 1]} : vector<16x32xbf16> to vector<16x8xbf16>
    %cst_57 = arith.constant dense<0.000000e+00> : vector<8x16xf32>
    %159 = tpu.matmul %156, %157, %cst_57 {dimension_numbers = #tpu.dot_dimension_numbers<[1], [1], [0], [0], [0, 0, 1, 0], [], []>} : vector<8x8xbf16>, vector<16x8xbf16>, vector<8x16xf32> -> vector<8x16xf32>
    %cst_58 = arith.constant dense<0xFF800000> : vector<8xf32>
    %160 = vector.multi_reduction <maximumf>, %159, %cst_58 [1] : vector<8x16xf32> to vector<8xf32>
    %161 = vector.shape_cast %160 : vector<8xf32> to vector<8x1xf32>
    %162 = vector.broadcast %161 : vector<8x1xf32> to vector<8x16xf32>
    %163 = arith.subf %159, %162 : vector<8x16xf32>
    %164 = math.exp %163 : vector<8x16xf32>
    %cst_59 = arith.constant dense<0.000000e+00> : vector<8xf32>
    %165 = vector.multi_reduction <add>, %164, %cst_59 [1] : vector<8x16xf32> to vector<8xf32>
    %166 = vector.shape_cast %165 : vector<8xf32> to vector<8x1xf32>
    %167 = tpu.reciprocal %166 : vector<8x1xf32> -> vector<8x1xf32>
    %168 = vector.broadcast %167 : vector<8x1xf32> to vector<8x16xf32>
    %169 = arith.mulf %164, %168 : vector<8x16xf32>
    %170 = arith.truncf %169 : vector<8x16xf32> to vector<8x16xbf16>
    %cst_60 = arith.constant dense<0.000000e+00> : vector<8x8xf32>
    %171 = tpu.matmul %170, %158, %cst_60 {dimension_numbers = #tpu.dot_dimension_numbers<[1], [0], [0], [1], [0, 0, 1, 1], [], []>} : vector<8x16xbf16>, vector<16x8xbf16>, vector<8x8xf32> -> vector<8x8xf32>
    %172 = vector.extract_strided_slice %121 {offsets = [0, 24], sizes = [8, 8], strides = [1, 1]} : vector<8x32xbf16> to vector<8x8xbf16>
    %173 = vector.extract_strided_slice %122 {offsets = [0, 24], sizes = [16, 8], strides = [1, 1]} : vector<16x32xbf16> to vector<16x8xbf16>
    %174 = vector.extract_strided_slice %123 {offsets = [0, 24], sizes = [16, 8], strides = [1, 1]} : vector<16x32xbf16> to vector<16x8xbf16>
    %cst_61 = arith.constant dense<0.000000e+00> : vector<8x16xf32>
    %175 = tpu.matmul %172, %173, %cst_61 {dimension_numbers = #tpu.dot_dimension_numbers<[1], [1], [0], [0], [0, 0, 1, 0], [], []>} : vector<8x8xbf16>, vector<16x8xbf16>, vector<8x16xf32> -> vector<8x16xf32>
    %cst_62 = arith.constant dense<0xFF800000> : vector<8xf32>
    %176 = vector.multi_reduction <maximumf>, %175, %cst_62 [1] : vector<8x16xf32> to vector<8xf32>
    %177 = vector.shape_cast %176 : vector<8xf32> to vector<8x1xf32>
    %178 = vector.broadcast %177 : vector<8x1xf32> to vector<8x16xf32>
    %179 = arith.subf %175, %178 : vector<8x16xf32>
    %180 = math.exp %179 : vector<8x16xf32>
    %cst_63 = arith.constant dense<0.000000e+00> : vector<8xf32>
    %181 = vector.multi_reduction <add>, %180, %cst_63 [1] : vector<8x16xf32> to vector<8xf32>
    %182 = vector.shape_cast %181 : vector<8xf32> to vector<8x1xf32>
    %183 = tpu.reciprocal %182 : vector<8x1xf32> -> vector<8x1xf32>
    %184 = vector.broadcast %183 : vector<8x1xf32> to vector<8x16xf32>
    %185 = arith.mulf %180, %184 : vector<8x16xf32>
    %186 = arith.truncf %185 : vector<8x16xf32> to vector<8x16xbf16>
    %cst_64 = arith.constant dense<0.000000e+00> : vector<8x8xf32>
    %187 = tpu.matmul %186, %174, %cst_64 {dimension_numbers = #tpu.dot_dimension_numbers<[1], [0], [0], [1], [0, 0, 1, 1], [], []>} : vector<8x16xbf16>, vector<16x8xbf16>, vector<8x8xf32> -> vector<8x8xf32>
    %188 = tpu.concatenate %139, %155, %171, %187 in 1 : vector<8x8xf32>, vector<8x8xf32>, vector<8x8xf32>, vector<8x8xf32> -> vector<8x32xf32>
    %189 = arith.truncf %188 : vector<8x32xf32> to vector<8x32xbf16>
    %c0_65 = arith.constant 0 : index
    %c0_66 = arith.constant 0 : index
    %190 = vector.load %arg13[%c0_65, %c0_66] : memref<32x32xbf16, #tpu.memory_space<vmem>>, vector<32x32xbf16>
    %cst_67 = arith.constant dense<0.000000e+00> : vector<8x32xf32>
    %191 = tpu.matmul %189, %190, %cst_67 {dimension_numbers = #tpu.dot_dimension_numbers<[1], [0], [0], [1], [0, 0, 1, 1], [], []>} : vector<8x32xbf16>, vector<32x32xbf16>, vector<8x32xf32> -> vector<8x32xf32>
    %c0_68 = arith.constant 0 : index
    %c0_69 = arith.constant 0 : index
    %192 = vector.load %arg14[%c0_68, %c0_69] : memref<1x32xf32, #tpu.memory_space<vmem>>, vector<1x32xf32>
    %193 = vector.broadcast %192 : vector<1x32xf32> to vector<8x32xf32>
    %194 = arith.addf %191, %193 : vector<8x32xf32>
    %195 = arith.addf %108, %194 : vector<8x32xf32>
    %cst_70 = arith.constant dense<0.000000e+00> : vector<8xf32>
    %196 = vector.multi_reduction <add>, %195, %cst_70 [1] : vector<8x32xf32> to vector<8xf32>
    %197 = vector.shape_cast %196 : vector<8xf32> to vector<8x1xf32>
    %cst_71 = arith.constant 3.200000e+01 : f32
    %198 = vector.broadcast %cst_71 : f32 to vector<8x1xf32>
    %199 = arith.divf %197, %198 : vector<8x1xf32>
    %200 = vector.broadcast %199 : vector<8x1xf32> to vector<8x32xf32>
    %201 = arith.subf %195, %200 : vector<8x32xf32>
    %202 = arith.mulf %201, %201 : vector<8x32xf32>
    %cst_72 = arith.constant dense<0.000000e+00> : vector<8xf32>
    %203 = vector.multi_reduction <add>, %202, %cst_72 [1] : vector<8x32xf32> to vector<8xf32>
    %204 = vector.shape_cast %203 : vector<8xf32> to vector<8x1xf32>
    %cst_73 = arith.constant 3.200000e+01 : f32
    %205 = vector.broadcast %cst_73 : f32 to vector<8x1xf32>
    %206 = arith.divf %204, %205 : vector<8x1xf32>
    %cst_74 = arith.constant 9.99999974E-6 : f32
    %207 = vector.broadcast %cst_74 : f32 to vector<8x1xf32>
    %208 = arith.addf %206, %207 : vector<8x1xf32>
    %209 = math.rsqrt %208 : vector<8x1xf32>
    %210 = vector.broadcast %209 : vector<8x1xf32> to vector<8x32xf32>
    %211 = arith.mulf %201, %210 : vector<8x32xf32>
    %c0_75 = arith.constant 0 : index
    %c0_76 = arith.constant 0 : index
    %212 = vector.load %arg15[%c0_75, %c0_76] : memref<1x32xf32, #tpu.memory_space<vmem>>, vector<1x32xf32>
    %213 = vector.broadcast %212 : vector<1x32xf32> to vector<8x32xf32>
    %214 = arith.mulf %211, %213 : vector<8x32xf32>
    %c0_77 = arith.constant 0 : index
    %c0_78 = arith.constant 0 : index
    %215 = vector.load %arg16[%c0_77, %c0_78] : memref<1x32xf32, #tpu.memory_space<vmem>>, vector<1x32xf32>
    %216 = vector.broadcast %215 : vector<1x32xf32> to vector<8x32xf32>
    %217 = arith.addf %214, %216 : vector<8x32xf32>
    %218 = arith.truncf %217 : vector<8x32xf32> to vector<8x32xbf16>
    %c0_79 = arith.constant 0 : index
    %c0_80 = arith.constant 0 : index
    %219 = vector.load %arg17[%c0_79, %c0_80] : memref<32x64xbf16, #tpu.memory_space<vmem>>, vector<32x64xbf16>
    %cst_81 = arith.constant dense<0.000000e+00> : vector<8x64xf32>
    %220 = tpu.matmul %218, %219, %cst_81 {dimension_numbers = #tpu.dot_dimension_numbers<[1], [0], [0], [1], [0, 0, 1, 1], [], []>} : vector<8x32xbf16>, vector<32x64xbf16>, vector<8x64xf32> -> vector<8x64xf32>
    %c0_82 = arith.constant 0 : index
    %c0_83 = arith.constant 0 : index
    %221 = vector.load %arg18[%c0_82, %c0_83] : memref<1x64xf32, #tpu.memory_space<vmem>>, vector<1x64xf32>
    %222 = vector.broadcast %221 : vector<1x64xf32> to vector<8x64xf32>
    %223 = arith.addf %220, %222 : vector<8x64xf32>
    %cst_84 = arith.constant 0.000000e+00 : f32
    %224 = vector.broadcast %cst_84 : f32 to vector<8x64xf32>
    %225 = arith.maximumf %223, %224 : vector<8x64xf32>
    %226 = arith.truncf %225 : vector<8x64xf32> to vector<8x64xbf16>
    %c0_85 = arith.constant 0 : index
    %c0_86 = arith.constant 0 : index
    %227 = vector.load %arg19[%c0_85, %c0_86] : memref<64x32xbf16, #tpu.memory_space<vmem>>, vector<64x32xbf16>
    %cst_87 = arith.constant dense<0.000000e+00> : vector<8x32xf32>
    %228 = tpu.matmul %226, %227, %cst_87 {dimension_numbers = #tpu.dot_dimension_numbers<[1], [0], [0], [1], [0, 0, 1, 1], [], []>} : vector<8x64xbf16>, vector<64x32xbf16>, vector<8x32xf32> -> vector<8x32xf32>
    %c0_88 = arith.constant 0 : index
    %c0_89 = arith.constant 0 : index
    %229 = vector.load %arg20[%c0_88, %c0_89] : memref<1x32xf32, #tpu.memory_space<vmem>>, vector<1x32xf32>
    %230 = vector.broadcast %229 : vector<1x32xf32> to vector<8x32xf32>
    %231 = arith.addf %228, %230 : vector<8x32xf32>
    %232 = arith.addf %217, %231 : vector<8x32xf32>
    %cst_90 = arith.constant dense<0.000000e+00> : vector<8xf32>
    %233 = vector.multi_reduction <add>, %232, %cst_90 [1] : vector<8x32xf32> to vector<8xf32>
    %234 = vector.shape_cast %233 : vector<8xf32> to vector<8x1xf32>
    %cst_91 = arith.constant 3.200000e+01 : f32
    %235 = vector.broadcast %cst_91 : f32 to vector<8x1xf32>
    %236 = arith.divf %234, %235 : vector<8x1xf32>
    %237 = vector.broadcast %236 : vector<8x1xf32> to vector<8x32xf32>
    %238 = arith.subf %232, %237 : vector<8x32xf32>
    %239 = arith.mulf %238, %238 : vector<8x32xf32>
    %cst_92 = arith.constant dense<0.000000e+00> : vector<8xf32>
    %240 = vector.multi_reduction <add>, %239, %cst_92 [1] : vector<8x32xf32> to vector<8xf32>
    %241 = vector.shape_cast %240 : vector<8xf32> to vector<8x1xf32>
    %cst_93 = arith.constant 3.200000e+01 : f32
    %242 = vector.broadcast %cst_93 : f32 to vector<8x1xf32>
    %243 = arith.divf %241, %242 : vector<8x1xf32>
    %cst_94 = arith.constant 9.99999974E-6 : f32
    %244 = vector.broadcast %cst_94 : f32 to vector<8x1xf32>
    %245 = arith.addf %243, %244 : vector<8x1xf32>
    %246 = math.rsqrt %245 : vector<8x1xf32>
    %247 = vector.broadcast %246 : vector<8x1xf32> to vector<8x32xf32>
    %248 = arith.mulf %238, %247 : vector<8x32xf32>
    %c0_95 = arith.constant 0 : index
    %c0_96 = arith.constant 0 : index
    %249 = vector.load %arg21[%c0_95, %c0_96] : memref<1x32xf32, #tpu.memory_space<vmem>>, vector<1x32xf32>
    %250 = vector.broadcast %249 : vector<1x32xf32> to vector<8x32xf32>
    %251 = arith.mulf %248, %250 : vector<8x32xf32>
    %c0_97 = arith.constant 0 : index
    %c0_98 = arith.constant 0 : index
    %252 = vector.load %arg22[%c0_97, %c0_98] : memref<1x32xf32, #tpu.memory_space<vmem>>, vector<1x32xf32>
    %253 = vector.broadcast %252 : vector<1x32xf32> to vector<8x32xf32>
    %254 = arith.addf %251, %253 : vector<8x32xf32>
    %c0_99 = arith.constant 0 : index
    %c0_100 = arith.constant 0 : index
    %c0_101 = arith.constant 0 : index
    %255 = vector.load %arg23[%c0_99, %c0_100, %c0_101] : memref<1x8x32xf32, #tpu.memory_space<vmem>>, vector<1x8x32xf32>
    %256 = vector.shape_cast %255 : vector<1x8x32xf32> to vector<8x32xf32>
    %257 = vector.shape_cast %254 : vector<8x32xf32> to vector<1x8x32xf32>
    tpu.vector_store %arg23[%c0_99, %c0_100, %c0_101], %257 {strides = array<i32>} : memref<1x8x32xf32, #tpu.memory_space<vmem>>, vector<1x8x32xf32>,
    return
  }
  func.func @transform_0(%arg0: i32) -> (i32, i32, i32) {
    %c0_i32 = arith.constant 0 : i32
    %c0_i32_0 = arith.constant 0 : i32
    %c0_i32_1 = arith.constant 0 : i32
    return %arg0, %c0_i32, %c0_i32_0 : i32, i32, i32
  }
  func.func @transform_1(%arg0: i32) -> (i32, i32, i32) {
    %c0_i32 = arith.constant 0 : i32
    %c0_i32_0 = arith.constant 0 : i32
    %c0_i32_1 = arith.constant 0 : i32
    return %arg0, %c0_i32, %c0_i32_0 : i32, i32, i32
  }
  func.func @transform_2(%arg0: i32) -> (i32, i32) {
    %c0_i32 = arith.constant 0 : i32
    %c0_i32_0 = arith.constant 0 : i32
    %c0_i32_1 = arith.constant 0 : i32
    return %c0_i32, %c0_i32_0 : i32, i32
  }
  func.func @transform_3(%arg0: i32) -> (i32, i32) {
    %c0_i32 = arith.constant 0 : i32
    %c0_i32_0 = arith.constant 0 : i32
    %c0_i32_1 = arith.constant 0 : i32
    return %c0_i32, %c0_i32_0 : i32, i32
  }
  func.func @transform_4(%arg0: i32) -> (i32, i32) {
    %c0_i32 = arith.constant 0 : i32
    %c0_i32_0 = arith.constant 0 : i32
    %c0_i32_1 = arith.constant 0 : i32
    return %c0_i32, %c0_i32_0 : i32, i32
  }
  func.func @transform_5(%arg0: i32) -> (i32, i32) {
    %c0_i32 = arith.constant 0 : i32
    %c0_i32_0 = arith.constant 0 : i32
    %c0_i32_1 = arith.constant 0 : i32
    return %c0_i32, %c0_i32_0 : i32, i32
  }
  func.func @transform_6(%arg0: i32) -> (i32, i32) {
    %c0_i32 = arith.constant 0 : i32
    %c0_i32_0 = arith.constant 0 : i32
    %c0_i32_1 = arith.constant 0 : i32
    return %c0_i32, %c0_i32_0 : i32, i32
  }
  func.func @transform_7(%arg0: i32) -> (i32, i32) {
    %c0_i32 = arith.constant 0 : i32
    %c0_i32_0 = arith.constant 0 : i32
    %c0_i32_1 = arith.constant 0 : i32
    return %c0_i32, %c0_i32_0 : i32, i32
  }
  func.func @transform_8(%arg0: i32) -> (i32, i32) {
    %c0_i32 = arith.constant 0 : i32
    %c0_i32_0 = arith.constant 0 : i32
    %c0_i32_1 = arith.constant 0 : i32
    return %c0_i32, %c0_i32_0 : i32, i32
  }
  func.func @transform_9(%arg0: i32) -> (i32, i32) {
    %c0_i32 = arith.constant 0 : i32
    %c0_i32_0 = arith.constant 0 : i32
    %c0_i32_1 = arith.constant 0 : i32
    return %c0_i32, %c0_i32_0 : i32, i32
  }
  func.func @transform_10(%arg0: i32) -> (i32, i32) {
    %c0_i32 = arith.constant 0 : i32
    %c0_i32_0 = arith.constant 0 : i32
    %c0_i32_1 = arith.constant 0 : i32
    return %c0_i32, %c0_i32_0 : i32, i32
  }
  func.func @transform_11(%arg0: i32) -> (i32, i32) {
    %c0_i32 = arith.constant 0 : i32
    %c0_i32_0 = arith.constant 0 : i32
    %c0_i32_1 = arith.constant 0 : i32
    return %c0_i32, %c0_i32_0 : i32, i32
  }
  func.func @transform_12(%arg0: i32) -> (i32, i32) {
    %c0_i32 = arith.constant 0 : i32
    %c0_i32_0 = arith.constant 0 : i32
    %c0_i32_1 = arith.constant 0 : i32
    return %c0_i32, %c0_i32_0 : i32, i32
  }
  func.func @transform_13(%arg0: i32) -> (i32, i32) {
    %c0_i32 = arith.constant 0 : i32
    %c0_i32_0 = arith.constant 0 : i32
    %c0_i32_1 = arith.constant 0 : i32
    return %c0_i32, %c0_i32_0 : i32, i32
  }
  func.func @transform_14(%arg0: i32) -> (i32, i32) {
    %c0_i32 = arith.constant 0 : i32
    %c0_i32_0 = arith.constant 0 : i32
    %c0_i32_1 = arith.constant 0 : i32
    return %c0_i32, %c0_i32_0 : i32, i32
  }
  func.func @transform_15(%arg0: i32) -> (i32, i32) {
    %c0_i32 = arith.constant 0 : i32
    %c0_i32_0 = arith.constant 0 : i32
    %c0_i32_1 = arith.constant 0 : i32
    return %c0_i32, %c0_i32_0 : i32, i32
  }
  func.func @transform_16(%arg0: i32) -> (i32, i32) {
    %c0_i32 = arith.constant 0 : i32
    %c0_i32_0 = arith.constant 0 : i32
    %c0_i32_1 = arith.constant 0 : i32
    return %c0_i32, %c0_i32_0 : i32, i32
  }
  func.func @transform_17(%arg0: i32) -> (i32, i32) {
    %c0_i32 = arith.constant 0 : i32
    %c0_i32_0 = arith.constant 0 : i32
    %c0_i32_1 = arith.constant 0 : i32
    return %c0_i32, %c0_i32_0 : i32, i32
  }
  func.func @transform_18(%arg0: i32) -> (i32, i32) {
    %c0_i32 = arith.constant 0 : i32
    %c0_i32_0 = arith.constant 0 : i32
    %c0_i32_1 = arith.constant 0 : i32
    return %c0_i32, %c0_i32_0 : i32, i32
  }
  func.func @transform_19(%arg0: i32) -> (i32, i32) {
    %c0_i32 = arith.constant 0 : i32
    %c0_i32_0 = arith.constant 0 : i32
    %c0_i32_1 = arith.constant 0 : i32
    return %c0_i32, %c0_i32_0 : i32, i32
  }
  func.func @transform_20(%arg0: i32) -> (i32, i32) {
    %c0_i32 = arith.constant 0 : i32
    %c0_i32_0 = arith.constant 0 : i32
    %c0_i32_1 = arith.constant 0 : i32
    return %c0_i32, %c0_i32_0 : i32, i32
  }
  func.func @transform_21(%arg0: i32) -> (i32, i32) {
    %c0_i32 = arith.constant 0 : i32
    %c0_i32_0 = arith.constant 0 : i32
    %c0_i32_1 = arith.constant 0 : i32
    return %c0_i32, %c0_i32_0 : i32, i32
  }
  func.func @transform_22(%arg0: i32) -> (i32, i32, i32) {
    %c0_i32 = arith.constant 0 : i32
    %c0_i32_0 = arith.constant 0 : i32
    %c0_i32_1 = arith.constant 0 : i32
    return %arg0, %c0_i32, %c0_i32_0 : i32, i32, i32
  }
}

</mosaic_0001>

<bundles_post_ra>
// kernel: _lambda_.1
= control target key start
LH: loop header
LB: loop body
LE: loop exit
PB: predicated region body
PF: predicated region fallthrough
CT: control target
= control target key end

     0   :  { %s3060_s0 = inlined_call_operand.vmem [shape: f32[2,8,32], index: 0, kind: input, shape index: {}]   ;;  %s3061_s1 = inlined_call_operand.vmem [shape: f32[2,16,32], index: 1, kind: input, shape index: {}]   ;;  %s3062_s2 = inlined_call_operand.vmem [shape: bf16[32,96], index: 2, kind: input, shape index: {}]   ;;  %s3063_s3 = inlined_call_operand.vmem [shape: f32[1,96], index: 3, kind: input, shape index: {}]   ;;  %s3064_s4 = inlined_call_operand.vmem [shape: bf16[32,32], index: 4, kind: input, shape index: {}]   ;;  %s3065_s5 = inlined_call_operand.vmem [shape: f32[1,32], index: 5, kind: input, shape index: {}, may-alias: {5,7,9,13,15,19,21}]   ;;  %s3066_s6 = inlined_call_operand.vmem [shape: f32[1,32], index: 6, kind: input, shape index: {}, may-alias: {6,14,20}]   ;;  %s3067_s7 = inlined_call_operand.vmem [shape: f32[1,32], index: 7, kind: input, shape index: {}, may-alias: {5,7,9,13,15,19,21}]   ;;  %s3068_s8 = inlined_call_operand.vmem [shape: bf16[32,32], index: 8, kind: input, shape index: {}]   ;;  %s3069_s9 = inlined_call_operand.vmem [shape: f32[1,32], index: 9, kind: input, shape index: {}, may-alias: {5,7,9,13,15,19,21}]   ;;  %s3070_s10 = inlined_call_operand.vmem [shape: bf16[32,64], index: 10, kind: input, shape index: {}]   ;;  %s3071_s11 = inlined_call_operand.vmem [shape: f32[1,64], index: 11, kind: input, shape index: {}, may-alias: {11,17}]   ;;  %s3072_s12 = inlined_call_operand.vmem [shape: bf16[32,32], index: 12, kind: input, shape index: {}]   ;;  %s3073_s13 = inlined_call_operand.vmem [shape: f32[1,32], index: 13, kind: input, shape index: {}, may-alias: {5,7,9,13,15,19,21}]   ;;  %s3074_s14 = inlined_call_operand.vmem [shape: f32[1,32], index: 14, kind: input, shape index: {}, may-alias: {6,14,20}]   ;;  %s3075_s15 = inlined_call_operand.vmem [shape: f32[1,32], index: 15, kind: input, shape index: {}, may-alias: {5,7,9,13,15,19,21}]   ;;  %s3076_s16 = inlined_call_operand.vmem [shape: bf16[32,64], index: 16, kind: input, shape index: {}]   ;;  %s3077_s17 = inlined_call_operand.vmem [shape: f32[1,64], index: 17, kind: input, shape index: {}, may-alias: {11,17}]   ;;  %s3078_s18 = inlined_call_operand.vmem [shape: bf16[64,32], index: 18, kind: input, shape index: {}]   ;;  %s3079_s19 = inlined_call_operand.vmem [shape: f32[1,32], index: 19, kind: input, shape index: {}, may-alias: {5,7,9,13,15,19,21}]   ;;  %s3080_s20 = inlined_call_operand.vmem [shape: f32[1,32], index: 20, kind: input, shape index: {}, may-alias: {6,14,20}]   ;;  %s3081_s21 = inlined_call_operand.vmem [shape: f32[1,32], index: 21, kind: input, shape index: {}, may-alias: {5,7,9,13,15,19,21}]   ;;  %s3082_s22 = inlined_call_operand.vmem [shape: f32[2,8,32], index: 22, kind: output, shape index: {}]  }
   0x1   :  { %3095 = sst [smem:[#allocation2_spill]] %s3060_s0 }
   0x2   :  { %3096 = sst [smem:[#allocation3_spill]] %s3061_s1 }
   0x3   :  { %3097 = sst [smem:[#allocation4_spill]] %s3062_s2 }
   0x4   :  { %3098 = sst [smem:[#allocation5_spill]] %s3063_s3  ;;  %s2747_s3 = smov 0  }
   0x5   :  { %3099 = sst [smem:[#allocation6_spill]] %s3064_s4 }
   0x6   :  { %3100 = sst [smem:[#allocation7_spill]] %s3065_s5 }
   0x7   :  { %3101 = sst [smem:[#allocation8_spill]] %s3066_s6 }
   0x8 LB: > { %s2255_s28 = sadd.s32 4294967295, %s2614_s3   ;;  %p2259_p0 = scmp.ge.s32.totalorder %s2614_s3, 1  ;;  %s2614_s3 = sphi %s2747_s3, %s32_s3  }
   0x9   : > { %p621_p1 = scmp.lt.s32.totalorder %s2614_s3, 3 }
   0xb   : > { %p622_p2 = pnand %p2259_p0, %p621_p1 }
   0xc   : > { %s3102_s4 = sld [smem:[#allocation4_spill]] (!%p622_p2)  ;;  %v2616_v1 = vmov (!%p622_p2), 0.0   ;;  %vm2617_vm0 = vmmov (!%p622_p2), 0   ;;  %p686_p3 = scmp.lt.s32.totalorder (!%p622_p2), %s2255_s28, 1  ;;  %vm728_vm1 = vcmask (!%p622_p2), 261120   ;;  %vm776_vm2 = vcmask (!%p622_p2), 64512  }
   0xd   : > { %625 = sbr.rel (%p622_p2) target bundleno = 4308 (0x10d4), region = 108  ;;  %2374 = vmatprep.subr.bf16.mxu1 (!%p622_p2), %v2616_v1  ;;  %2388 = vmatprep.subr.bf16.mxu0 (!%p622_p2), %v2616_v1  ;;  %s3103_s6 = sld [smem:[#allocation2_spill]] (!%p622_p2)  ;;  %vm840_vm3 = vcmask (!%p622_p2), 1043456   ;;  %vm1227_vm4 = vcmask (!%p622_p2), 130048   ;;  %vm1229_vm5 = vcmask (!%p622_p2), 195584   ;;  %vm2115_vm6 = vcmask (!%p622_p2), 523264  }
   0xe   : > { %2378 = vmatprep.mubr.msk.bf16.mxu1 (!%p622_p2), %vm2617_vm0, %v2616_v1  ;;  %2390 = vmatprep.mubr.msk.bf16.mxu0 (!%p622_p2), %vm2617_vm0, %v2616_v1  ;;  %s3104_s27 = sld [smem:[#allocation5_spill]] (!%p622_p2)  ;;  %s2618_s29 = smov (!%p622_p2), 120  }
   0xf   : > { %s3092_s30 = smov (!%p622_p2), 96   ;;  %s3091_s0 = smov (!%p622_p2), 80  }
  0x10   : > { %s3086_s23 = smov (!%p622_p2), 88   ;;  %s3087_s5 = smov (!%p622_p2), 72  }
  0x11   : > { %s2623_s24 = smov (!%p622_p2), 112   ;;  %s2626_s26 = smov (!%p622_p2), 64  }
  0x12   : > { %v2554_v0 = vld [vmem:[%s3102_s4] sm:$0xff] (!%p622_p2)   ;;  %v2555_v2 = vld [vmem:[%s3102_s4 + $0x8] sm:$0xff] (!%p622_p2)   ;;  %s2627_s2 = smov (!%p622_p2), 40  }
  0x13   : > { %2375 = vmatpush3.bf16.msra.mxu1 (!%p622_p2), %v2554_v0 }
  0x14   : > { %2376 = vmatprep.subr.bf16.mxu1 %v2616_v1  ;;  %s3119_s28 = smov (!%p686_p3, %s2255_s28), 1  ;;  %v2264_v5 = vld [vmem:[%s3104_s27] ss:$0 sm:$0xff]  ;;  %s2628_s27 = smov 48  }
  0x15   : > { %s3085_s1 = sshll.u32 %s3119_s28, 3 }
  0x16   : > { %s689_s25 = scalar_lea.vmem %s3103_s6, %s3085_s1  ;;  %s3093_s6 = smov 104  }
  0x17   : > { %2377 = vmatpush3.bf16.msra.mxu1 %v2555_v2  ;;  %v2777_v3 = vld [vmem:[%s689_s25] sm:$0xff]  ;;  %s2625_s25 = smov 56   ;;  %s2318_s1 = sshll.u32 %s3119_s28, 4 }
  0x18   : > { %2382 = vmatprep.subr.bf16.mxu1 %v2616_v1  ;;  %v704_v4 = vpack.c.bf16 %v2777_v3, %v2777_v3 }
  0x1a   : > { %2379 = vmatmul.mubr.msk.bf16.vlgmr.msra.gmra.mrb[0].mxu1 %vm728_vm1, %v704_v4 }
  0x1b   : > { %2384 = vmatprep.mubr.msk.bf16.mxu1 %vm2617_vm0, %v2616_v1 }
  0xed   : > { %v766_v6 = vpop.f32.mrb[0].mxu1 }
  0xee   : > { %v767_v7 = vadd.f32 %v2264_v5, %v766_v6  ;;  %v2380_v8 = vpop.f32.mrb[1].mxu1 }
  0xef   : > { %v769_v9 = vpop.f32.mrb[2].mxu1 }
  0xf0   : > { %v2787_v10 = vpack.c.bf16 %v767_v7, %v767_v7  ;;  %v2381_v11 = vpop.f32.mrb[3].mxu1 }
  0xf2   : > { %884 = vrot.lane.b32.xlu1 %v2787_v10, %s2618_s29  ;;  %774 = vrot.lane.b32.xlu0 %v2787_v10, %s3092_s30  ;;  %s3107_s30 = sld [smem:[#allocation3_spill]] }
  0xf6   : > { %996 = vrot.lane.b32.xlu1 %v2787_v10, %s3091_s0  ;;  %886 = vrot.lane.b32.xlu0 %v2787_v10, %s3086_s23  ;;  %s3108_s23 = sld [smem:[#allocation8_spill]]  ;;  %s3109_s0 = smov 104  }
  0xfa   : > { %1106 = vrot.lane.b32.xlu1 %v2787_v10, %s3087_s5  ;;  %994 = vrot.lane.b32.xlu0 %v2787_v10, %s2623_s24  ;;  %s3089_s5 = smov 16  }
  0xfe   : > { %1104 = vrot.lane.b32.xlu0 %v2787_v10, %s3093_s6  ;;  %s3117_s6 = sshll.u32 %s3119_s28, 3 }
 0x164   : > { %v775_v12 = vpop.permute.xlu0 %774  ;;  %v885_v15 = vpop.permute.xlu1 %884 }
 0x165   : > { %v781_v13 = vsel %vm776_vm2, %v775_v12, 0 }
 0x166   : > { %2383 = vmatpush3.bf16.xpose.msra.mxu1 %v781_v13 }
 0x167   : > { %2394 = vmatprep.subr.bf16.mxu1 %v2616_v1 }
 0x168   : > { %v887_v14 = vpop.permute.xlu0 %886  ;;  %v997_v17 = vpop.permute.xlu1 %996 }
 0x169   : > { %v892_v16 = vsel %vm776_vm2, %v887_v14, 0  ;;  %v1002_v18 = vsel %vm776_vm2, %v997_v17, 0 }
 0x16c   : > { %v1107_v19 = vpop.permute.xlu1 %1106  ;;  %v995_v20 = vpop.permute.xlu0 %994 }
 0x16d   : > { %2385 = vmatmul.mubr.msk.bf16.vlgmr.msra.gmra.mrb[4].mxu1 %vm776_vm2, %v2787_v10  ;;  %v1112_v21 = vsel %vm776_vm2, %v1107_v19, 0 }
 0x16e   : > { %2395 = vmatpush3.bf16.xpose.msra.mxu1 %v892_v16  ;;  %2396 = vmatprep.mubr.msk.bf16.mxu1 %vm2617_vm0, %v2616_v1 }
 0x16f   : > { %2406 = vmatprep.subr.bf16.mxu1 %v2616_v1 }
 0x170   : > { %v1105_v22 = vpop.permute.xlu0 %1104 }
 0x175   : > { %2397 = vmatmul.mubr.msk.bf16.vlgmr.msra.gmra.mrb[8].mxu1 %vm776_vm2, %v885_v15 }
 0x176   : > { %2407 = vmatpush3.bf16.xpose.msra.mxu1 %v1002_v18  ;;  %2408 = vmatprep.mubr.msk.bf16.mxu1 %vm2617_vm0, %v2616_v1 }
 0x177   : > { %2418 = vmatprep.subr.bf16.mxu1 %v2616_v1 }
 0x17d   : > { %2409 = vmatmul.mubr.msk.bf16.vlgmr.msra.gmra.mrb[12].mxu1 %vm776_vm2, %v995_v20 }
 0x17e   : > { %2419 = vmatpush3.bf16.xpose.msra.mxu1 %v1112_v21  ;;  %2420 = vmatprep.mubr.msk.bf16.mxu1 %vm2617_vm0, %v2616_v1 }
 0x17f   : > { %2430 = vmatprep.subr.bf16.mxu1 %v2616_v1 }
 0x185   : > { %2421 = vmatmul.mubr.msk.bf16.vlgmr.msra.gmra.mrb[16].mxu1 %vm776_vm2, %v1105_v22 }
 0x186   : > { %2434 = vmatprep.mubr.msk.bf16.mxu1 %vm2617_vm0, %v2616_v1 }
 0x240   : > { %v817_v23 = vpop.f32.mrb[4].mxu1 }
 0x241   : > { %v2386_v24 = vpop.f32.mrb[5].mxu1  ;;  %v823_v25 = vsel %vm776_vm2, %v817_v23, -inf }
 0x242   : > { %824 = vmax.xlane.f32.xlu1 %v823_v25  ;;  %v820_v26 = vpop.f32.mrb[6].mxu1 }
 0x243   : > { %v2387_v27 = vpop.f32.mrb[7].mxu1 }
 0x248   : > { %v928_v28 = vpop.f32.mrb[8].mxu1 }
 0x249   : > { %v2398_v29 = vpop.f32.mrb[9].mxu1  ;;  %v934_v30 = vsel %vm776_vm2, %v928_v28, -inf }
 0x24a   : > { %935 = vmax.xlane.f32.xlu0 %v934_v30  ;;  %v931_v31 = vpop.f32.mrb[10].mxu1 }
 0x24b   : > { %v2399_v32 = vpop.f32.mrb[11].mxu1 }
 0x250   : > { %v1038_v33 = vpop.f32.mrb[12].mxu1 }
 0x251   : > { %v2410_v34 = vpop.f32.mrb[13].mxu1  ;;  %v1044_v35 = vsel %vm776_vm2, %v1038_v33, -inf }
 0x252   : > { %1045 = vmax.xlane.f32.xlu0 %v1044_v35  ;;  %v1041_v36 = vpop.f32.mrb[14].mxu1 }
 0x253   : > { %v2411_v37 = vpop.f32.mrb[15].mxu1 }
 0x258   : > { %v1148_v38 = vpop.f32.mrb[16].mxu1 }
 0x259   : > { %v2422_v39 = vpop.f32.mrb[17].mxu1  ;;  %v1154_v40 = vsel %vm776_vm2, %v1148_v38, -inf }
 0x25a   : > { %1155 = vmax.xlane.f32.xlu1 %v1154_v40  ;;  %v1151_v41 = vpop.f32.mrb[18].mxu1 }
 0x25b   : > { %v2423_v42 = vpop.f32.mrb[19].mxu1 }
 0x2cf   : > { %v825_v43 = vpop.xlane.xlu1 %824 }
 0x2d0   : > { %v826_v44 = vsub.f32 %v817_v23, %v825_v43 }
 0x2d2   : > { %v827_v45 = vmul.f32 1.442695, %v826_v44 }
 0x2d4   : > { %2570 = vpow2.f32 %v827_v45 }
 0x2d7   : > { %v936_v46 = vpop.xlane.xlu0 %935 }
 0x2d8   : > { %v937_v47 = vsub.f32 %v928_v28, %v936_v46 }
 0x2da   : > { %v938_v48 = vmul.f32 1.442695, %v937_v47 }
 0x2dc   : > { %2572 = vpow2.f32 %v938_v48 }
 0x2de   : > { %v2571_v49 = vpop.eup %2570 }
 0x2df   : > { %v1046_v50 = vpop.xlane.xlu0 %1045  ;;  %v829_v51 = vsel %vm776_vm2, %v2571_v49, 0.0 }
 0x2e0   : > { %v1047_v52 = vsub.f32 %v1038_v33, %v1046_v50  ;;  %830 = vadd.xlane.f32.xlu0 %v829_v51 }
 0x2e2   : > { %v1048_v53 = vmul.f32 1.442695, %v1047_v52 }
 0x2e4   : > { %2574 = vpow2.f32 %v1048_v53 }
 0x2e6   : > { %v2573_v54 = vpop.eup %2572 }
 0x2e7   : > { %v940_v55 = vsel %vm776_vm2, %v2573_v54, 0.0  ;;  %v1156_v58 = vpop.xlane.xlu1 %1155 }
 0x2e8   : > { %941 = vadd.xlane.f32.xlu1 %v940_v55  ;;  %v1157_v59 = vsub.f32 %v1148_v38, %v1156_v58  ;;  %v2558_v58 = vld [vmem:[%s3070_s10] sm:$0xff]  }
 0x2ea   : > { %v1158_v60 = vmul.f32 1.442695, %v1157_v59 }
 0x2ec   : > { %2576 = vpow2.f32 %v1158_v60 }
 0x2ee   : > { %v2575_v56 = vpop.eup %2574 }
 0x2ef   : > { %v1050_v57 = vsel %vm776_vm2, %v2575_v56, 0.0 }
 0x2f0   : > { %1051 = vadd.xlane.f32.xlu0 %v1050_v57 }
 0x2f6   : > { %v2577_v61 = vpop.eup %2576 }
 0x2f7   : > { %v1160_v62 = vsel %vm776_vm2, %v2577_v61, 0.0 }
 0x2f9   : > { %946 = vrot.lane.b32.xlu1 %v2787_v10, %s2625_s25  ;;  %s3090_s25 = smov 8  }
 0x306   : > { %835 = vrot.lane.b32.xlu0 %v2787_v10, %s2626_s26  ;;  %s3088_s26 = smov 24  }
 0x30a   : > { %1166 = vrot.lane.b32.xlu0 %v2787_v10, %s2627_s2  ;;  %s3106_s2 = sld [smem:[#allocation7_spill]] }
 0x310   : > { %v2276_v50 = vld [vmem:[%s3106_s2] ss:$0 sm:$0xff] }
 0x31d   : > { %1161 = vadd.xlane.f32.xlu1 %v1160_v62 }
 0x32e   : > { %1056 = vrot.lane.b32.xlu1 %v2787_v10, %s2628_s27  ;;  %s3105_s27 = sld [smem:[#allocation6_spill]] }
 0x334   : > { %v2556_v33 = vld [vmem:[%s3105_s27] sm:$0xff]   ;;  %v2557_v34 = vld [vmem:[%s3105_s27 + $0x8] sm:$0xff]  }
 0x335   : > { %2431 = vmatpush3.bf16.msra.mxu1 %v2556_v33 }
 0x336   : > { %2432 = vmatprep.subr.bf16.mxu1 %v2616_v1 }
 0x339   : > { %2433 = vmatpush3.bf16.msra.mxu1 %v2557_v34 }
 0x33a   : > { %2446 = vmatprep.subr.bf16.mxu1 %v2616_v1 }
 0x36d   : > { %v831_v63 = vpop.xlane.xlu0 %830 }
 0x36e   : > { %2578 = vrcp.f32 %v831_v63 }
 0x375   : > { %v942_v0 = vpop.xlane.xlu1 %941 }
 0x376   : > { %2580 = vrcp.f32 %v942_v0 }
 0x378   : > { %v2579_v2 = vpop.eup %2578 }
 0x379   : > { %v833_v5 = vmul.f32 %v2579_v2, %v2571_v49  ;;  %v947_v8 = vpop.permute.xlu1 %946 }
 0x37a   : > { %v952_v12 = vsel %vm840_vm3, %v947_v8, 0 }
 0x37b   : > { %v834_v9 = vpack.c.bf16 %v833_v5, %v833_v5  ;;  %v2560_v5 = vld [vmem:[%s3068_s8] sm:$0xff]  }
 0x37d   : > { %v1052_v4 = vpop.xlane.xlu0 %1051 }
 0x37e   : > { %2582 = vrcp.f32 %v1052_v4 }
 0x380   : > { %v2581_v11 = vpop.eup %2580 }
 0x381   : > { %v836_v6 = vpop.permute.xlu0 %835  ;;  %v944_v10 = vmul.f32 %v2581_v11, %v2573_v54 }
 0x382   : > { %v842_v7 = vsel %vm840_vm3, %v836_v6, 0  ;;  %v2561_v6 = vld [vmem:[%s3068_s8 + $0x8] sm:$0xff]  }
 0x383   : > { %2389 = vmatpush3.bf16.msra.mxu0 %v842_v7  ;;  %v945_v13 = vpack.c.bf16 %v944_v10, %v944_v10 }
 0x384   : > { %2400 = vmatprep.subr.bf16.mxu0 %v2616_v1 }
 0x385   : > { %v1167_v19 = vpop.permute.xlu0 %1166 }
 0x386   : > { %2391 = vmatmul.mubr.msk.bf16.vlgmr.msra.gmra.mrb[0].mxu0 %vm776_vm2, %v834_v9  ;;  %v1172_v21 = vsel %vm840_vm3, %v1167_v19, 0 }
 0x387   : > { %2401 = vmatpush3.bf16.msra.mxu0 %v952_v12  ;;  %2402 = vmatprep.mubr.msk.bf16.mxu0 %vm2617_vm0, %v2616_v1  ;;  %v2280_v12 = vld [vmem:[%s3108_s23] ss:$0 sm:$0xff]  ;;  %s3113_s23 = smov 88  }
 0x388   : > { %2412 = vmatprep.subr.bf16.mxu0 %v2616_v1  ;;  %v2583_v14 = vpop.eup %2582 }
 0x389   : > { %v1054_v16 = vmul.f32 %v2583_v14, %v2575_v56 }
 0x38b   : > { %v1055_v20 = vpack.c.bf16 %v1054_v16, %v1054_v16 }
 0x38e   : > { %2403 = vmatmul.mubr.msk.bf16.vlgmr.msra.gmra.mrb[4].mxu0 %vm776_vm2, %v945_v13  ;;  %v2281_v13 = vld [vmem:[%s3067_s7] ss:$0 sm:$0xff] }
 0x38f   : > { %2414 = vmatprep.mubr.msk.bf16.mxu0 %vm2617_vm0, %v2616_v1 }
 0x3aa   : > { %v1162_v15 = vpop.xlane.xlu1 %1161 }
 0x3ab   : > { %2584 = vrcp.f32 %v1162_v15 }
 0x3ae   : > { %v1057_v17 = vpop.permute.xlu1 %1056 }
 0x3af   : > { %v1062_v18 = vsel %vm840_vm3, %v1057_v17, 0  ;;  %v2286_v17 = vld [vmem:[%s3071_s11] ss:$0 sm:$0xff] }
 0x3b0   : > { %2413 = vmatpush3.bf16.msra.mxu0 %v1062_v18 }
 0x3b1   : > { %2424 = vmatprep.subr.bf16.mxu0 %v2616_v1 }
 0x3b3   : > { %2415 = vmatmul.mubr.msk.bf16.vlgmr.msra.gmra.mrb[8].mxu0 %vm776_vm2, %v1055_v20 }
 0x3b4   : > { %2425 = vmatpush3.bf16.msra.mxu0 %v1172_v21  ;;  %2426 = vmatprep.mubr.msk.bf16.mxu0 %vm2617_vm0, %v2616_v1 }
 0x3b5   : > { %v2585_v22 = vpop.eup %2584  ;;  %2438 = vmatprep.subr.bf16.mxu0 %v2616_v1 }
 0x3b6   : > { %v1164_v23 = vmul.f32 %v2585_v22, %v2577_v61 }
 0x3b8   : > { %v1165_v24 = vpack.c.bf16 %v1164_v23, %v1164_v23 }
 0x3bb   : > { %2427 = vmatmul.mubr.msk.bf16.vlgmr.msra.gmra.mrb[12].mxu0 %vm776_vm2, %v1165_v24 }
 0x3bc   : > { %2442 = vmatprep.mubr.msk.bf16.mxu0 %vm2617_vm0, %v2616_v1  ;;  %2439 = vmatpush3.bf16.msra.mxu0 %v2560_v5 }
 0x3bd   : > { %2440 = vmatprep.subr.bf16.mxu0 %v2616_v1 }
 0x3c0   : > { %2441 = vmatpush3.bf16.msra.mxu0 %v2561_v6 }
 0x3c1   : > { %2454 = vmatprep.subr.bf16.mxu0 %v2616_v1 }
 0x459   : > { %v878_v25 = vpop.f32.mrb[0].mxu0 }
 0x45a   : > { %v2392_v26 = vpop.f32.mrb[1].mxu0 }
 0x45b   : > { %v881_v27 = vpop.f32.mrb[2].mxu0  ;;  %v2282_v26 = vld [vmem:[%s3069_s9] ss:$0 sm:$0xff] }
 0x45c   : > { %v2393_v28 = vpop.f32.mrb[3].mxu0 }
 0x461   : > { %v988_v29 = vpop.f32.mrb[4].mxu0 }
 0x462   : > { %1215 = vrot.lane.b32.xlu1 %v988_v29, %s3090_s25  ;;  %v2404_v30 = vpop.f32.mrb[5].mxu0  ;;  %s3116_s25 = smov 24  }
 0x463   : > { %v991_v31 = vpop.f32.mrb[6].mxu0 }
 0x464   : > { %v2405_v32 = vpop.f32.mrb[7].mxu0 }
 0x486   : > { %v1098_v35 = vpop.f32.mrb[8].mxu0 }
 0x487   : > { %1219 = vrot.lane.b32.xlu0 %v1098_v35, %s3089_s5  ;;  %v2416_v36 = vpop.f32.mrb[9].mxu0  ;;  %s694_s5 = scalar_lea.vmem %s3107_s30, %s2318_s1  ;;  %s3112_s1 = smov 72  }
 0x488   : > { %v1101_v37 = vpop.f32.mrb[10].mxu0  ;;  %v701_v0 = vld [vmem:[%s694_s5] sm:$0xff]  ;;  %v702_v2 = vld [vmem:[%s694_s5 + $0x8] sm:$0xff]  ;;  %s3114_s5 = smov 8   ;;  %s3115_s30 = smov 16  }
 0x489   : > { %v2417_v38 = vpop.f32.mrb[11].mxu0  ;;  %v703_v4 = vpack.c.bf16 %v702_v2, %v701_v0 }
 0x48e   : > { %v1208_v39 = vpop.f32.mrb[12].mxu0 }
 0x48f   : > { %1223 = vrot.lane.b32.xlu1 %v1208_v39, %s3088_s26  ;;  %v2428_v40 = vpop.f32.mrb[13].mxu0  ;;  %s698_s26 = scalar_lea.vmem %s3082_s22, %s3117_s6 }
 0x490   : > { %v1211_v41 = vpop.f32.mrb[14].mxu0 }
 0x491   : > { %v2429_v42 = vpop.f32.mrb[15].mxu0 }
 0x4d4   : > { %v1216_v43 = vpop.permute.xlu1 %1215 }
 0x4d5   : > { %v1226_v45 = vsel %vm776_vm2, %v878_v25, %v1216_v43 }
 0x4f9   : > { %v1220_v44 = vpop.permute.xlu0 %1219 }
 0x4fa   : > { %v1228_v46 = vsel %vm1227_vm4, %v1226_v45, %v1220_v44 }
 0x501   : > { %v1224_v47 = vpop.permute.xlu1 %1223 }
 0x502   : > { %v1230_v48 = vsel %vm1229_vm5, %v1228_v46, %v1224_v47 }
 0x503   : > { %v1231_v49 = vpack.c.bf16 %v1230_v48, %v1230_v48 }
 0x505   : > { %2435 = vmatmul.mubr.msk.bf16.vlgmr.msra.gmra.mrb[20].mxu1 %vm728_vm1, %v1231_v49 }
 0x506   : > { %2450 = vmatprep.mubr.msk.bf16.mxu1 %vm2617_vm0, %v2616_v1  ;;  %2447 = vmatpush3.bf16.msra.mxu1 %v2558_v58 }
 0x507   : > { %2448 = vmatprep.subr.bf16.mxu1 %v2616_v1 }
 0x5d8   : > { %v1292_v51 = vpop.f32.mrb[20].mxu1 }
 0x5d9   : > { %v1293_v52 = vadd.f32 %v2276_v50, %v1292_v51  ;;  %v2436_v53 = vpop.f32.mrb[21].mxu1 }
 0x5da   : > { %v1295_v54 = vpop.f32.mrb[22].mxu1 }
 0x5db   : > { %v2437_v55 = vpop.f32.mrb[23].mxu1  ;;  %v1298_v56 = vadd.f32 %v1293_v52, %v2777_v3  ;;  %v2559_v3 = vld [vmem:[%s3070_s10 + $0x8] sm:$0xff]  }
 0x5dc   : > { %2449 = vmatpush3.bf16.msra.mxu1 %v2559_v3 }
 0x5dd   : > { %v1299_v57 = vsel %vm728_vm1, %v1298_v56, 0.0  ;;  %2460 = vmatprep.subr.bf16.mxu1 %v2616_v1 }
 0x5de   : > { %1300 = vadd.xlane.f32.xlu0 %v1299_v57 }
 0x5df   : > { %2451 = vmatmul.mubr.msk.bf16.vlgmr.msra.gmra.mrb[24].mxu1 %vm728_vm1, %v703_v4 }
 0x5e0   : > { %2462 = vmatprep.mubr.msk.bf16.mxu1 %vm2617_vm0, %v2616_v1 }
 0x66b   : > { %v1301_v59 = vpop.xlane.xlu0 %1300 }
 0x66c   : > { %v1303_v60 = vmul.f32 0.03125, %v1301_v59 }
 0x66e   : > { %v1304_v61 = vsub.f32 %v1298_v56, %v1303_v60 }
 0x670   : > { %v1305_v62 = vmul.f32 %v1304_v61, %v1304_v61 }
 0x672   : > { %v1306_v63 = vsel %vm728_vm1, %v1305_v62, 0.0 }
 0x673   : > { %1307 = vadd.xlane.f32.xlu1 %v1306_v63 }
 0x6b2   : > { %v1456_v18 = vpop.f32.mrb[24].mxu1 }
 0x6b3   : > { %v1457_v19 = vadd.f32 %v2286_v17, %v1456_v18  ;;  %v2452_v20 = vpop.f32.mrb[25].mxu1 }
 0x6b4   : > { %v1459_v21 = vpop.f32.mrb[26].mxu1 }
 0x6b5   : > { %v1460_v22 = vadd.f32 %v2286_v17, %v1459_v21  ;;  %v2453_v23 = vpop.f32.mrb[27].mxu1 }
 0x6b7   : > { %v2918_v24 = vpack.c.bf16 %v1460_v22, %v1457_v19 }
 0x6b9   : > { %1573 = vrot.lane.b32.xlu0 %v2918_v24, %s2618_s29  ;;  %v1469_v25 = vsel %vm776_vm2, %v2918_v24, 0 }
 0x6bd   : > { %1681 = vrot.lane.b32.xlu0 %v2918_v24, %s2623_s24 }
 0x6c1   : > { %1789 = vrot.lane.b32.xlu0 %v2918_v24, %s3109_s0 }
 0x700   : > { %v1308_v7 = vpop.xlane.xlu1 %1307 }
 0x701   : > { %v1309_v8 = vmul.f32 0.03125, %v1308_v7 }
 0x703   : > { %v1310_v9 = vadd.f32 1e-05, %v1309_v8 }
 0x705   : > { %2586 = vrsqrt.f32 %v1310_v9 }
 0x70f   : > { %v2587_v11 = vpop.eup %2586 }
 0x710   : > { %v1312_v10 = vmul.f32 %v2587_v11, %v1304_v61 }
 0x712   : > { %v1320_v14 = vmul.f32 %v2280_v12, %v1312_v10 }
 0x714   : > { %v2908_v15 = vadd.f32 %v2281_v13, %v1320_v14 }
 0x716   : > { %v1329_v16 = vpack.c.bf16 %v2908_v15, %v2908_v15 }
 0x718   : > { %2443 = vmatmul.mubr.msk.bf16.vlgmr.msra.gmra.mrb[16].mxu0 %vm728_vm1, %v1329_v16 }
 0x719   : > { %2456 = vmatprep.mubr.msk.bf16.mxu0 %vm2617_vm0, %v2616_v1  ;;  %2455 = vmatpush3.bf16.xpose.msra.mxu0 %v1469_v25 }
 0x71a   : > { %2466 = vmatprep.subr.bf16.mxu0 %v2616_v1 }
 0x72b   : > { %v1574_v31 = vpop.permute.xlu0 %1573 }
 0x72c   : > { %v1579_v34 = vsel %vm776_vm2, %v1574_v31, 0 }
 0x72f   : > { %v1682_v35 = vpop.permute.xlu0 %1681 }
 0x730   : > { %v1687_v37 = vsel %vm776_vm2, %v1682_v35, 0 }
 0x733   : > { %v1790_v38 = vpop.permute.xlu0 %1789 }
 0x734   : > { %v1795_v40 = vsel %vm776_vm2, %v1790_v38, 0 }
 0x7eb   : > { %v1390_v27 = vpop.f32.mrb[16].mxu0 }
 0x7ec   : > { %v1391_v28 = vadd.f32 %v2282_v26, %v1390_v27  ;;  %v2444_v29 = vpop.f32.mrb[17].mxu0 }
 0x7ed   : > { %v1393_v30 = vpop.f32.mrb[18].mxu0 }
 0x7ee   : > { %v1464_v32 = vpack.c.bf16 %v1391_v28, %v1391_v28  ;;  %v2445_v33 = vpop.f32.mrb[19].mxu0 }
 0x7f0   : > { %1571 = vrot.lane.b32.xlu1 %v1464_v32, %s2618_s29  ;;  %2457 = vmatmul.mubr.msk.bf16.vlgmr.msra.gmra.mrb[20].mxu0 %vm776_vm2, %v1464_v32  ;;  %s3110_s29 = smov 96  }
 0x7f1   : > { %2467 = vmatpush3.bf16.xpose.msra.mxu0 %v1579_v34  ;;  %2468 = vmatprep.mubr.msk.bf16.mxu0 %vm2617_vm0, %v2616_v1 }
 0x7f2   : > { %2478 = vmatprep.subr.bf16.mxu0 %v2616_v1 }
 0x7f4   : > { %1679 = vrot.lane.b32.xlu1 %v1464_v32, %s2623_s24  ;;  %s3111_s24 = smov 80  }
 0x7f8   : > { %1787 = vrot.lane.b32.xlu1 %v1464_v32, %s3109_s0 }
 0x862   : > { %v1572_v36 = vpop.permute.xlu1 %1571 }
 0x863   : > { %2469 = vmatmul.mubr.msk.bf16.vlgmr.msra.gmra.mrb[24].mxu0 %vm776_vm2, %v1572_v36 }
 0x864   : > { %2479 = vmatpush3.bf16.xpose.msra.mxu0 %v1687_v37  ;;  %2480 = vmatprep.mubr.msk.bf16.mxu0 %vm2617_vm0, %v2616_v1 }
 0x865   : > { %2490 = vmatprep.subr.bf16.mxu0 %v2616_v1 }
 0x866   : > { %v1680_v39 = vpop.permute.xlu1 %1679 }
 0x86a   : > { %v1788_v41 = vpop.permute.xlu1 %1787 }
 0x86b   : > { %2481 = vmatmul.mubr.msk.bf16.vlgmr.msra.gmra.mrb[28].mxu0 %vm776_vm2, %v1680_v39 }
 0x86c   : > { %2491 = vmatpush3.bf16.xpose.msra.mxu0 %v1795_v40  ;;  %2492 = vmatprep.mubr.msk.bf16.mxu0 %vm2617_vm0, %v2616_v1 }
 0x86d   : > { %2502 = vmatprep.subr.bf16.mxu0 %v2616_v1 }
 0x873   : > { %2493 = vmatmul.mubr.msk.bf16.vlgmr.msra.gmra.mrb[32].mxu0 %vm776_vm2, %v1788_v41 }
 0x874   : > { %2506 = vmatprep.mubr.msk.bf16.mxu0 %vm2617_vm0, %v2616_v1 }
 0x8c3   : > { %v1505_v42 = vpop.f32.mrb[20].mxu0 }
 0x8c4   : > { %v2458_v43 = vpop.f32.mrb[21].mxu0  ;;  %v1511_v44 = vsel %vm1227_vm4, %v1505_v42, -inf }
 0x8c5   : > { %1512 = vmax.xlane.f32.xlu0 %v1511_v44  ;;  %v1508_v45 = vpop.f32.mrb[22].mxu0  ;;  %v2562_v44 = vld [vmem:[%s3072_s12] sm:$0xff]  }
 0x8c6   : > { %v2459_v46 = vpop.f32.mrb[23].mxu0  ;;  %2503 = vmatpush3.bf16.msra.mxu0 %v2562_v44 }
 0x8c7   : > { %2504 = vmatprep.subr.bf16.mxu0 %v2616_v1 }
 0x936   : > { %v1615_v47 = vpop.f32.mrb[24].mxu0 }
 0x937   : > { %v2470_v48 = vpop.f32.mrb[25].mxu0  ;;  %v1621_v49 = vsel %vm1227_vm4, %v1615_v47, -inf }
 0x938   : > { %1622 = vmax.xlane.f32.xlu1 %v1621_v49  ;;  %v1618_v50 = vpop.f32.mrb[26].mxu0  ;;  %v2563_v49 = vld [vmem:[%s3072_s12 + $0x8] sm:$0xff]  }
 0x939   : > { %v2471_v51 = vpop.f32.mrb[27].mxu0  ;;  %2505 = vmatpush3.bf16.msra.mxu0 %v2563_v49 }
 0x93a   : > { %2518 = vmatprep.subr.bf16.mxu0 %v2616_v1 }
 0x93e   : > { %v1723_v52 = vpop.f32.mrb[28].mxu0 }
 0x93f   : > { %v2482_v53 = vpop.f32.mrb[29].mxu0  ;;  %v1729_v54 = vsel %vm1227_vm4, %v1723_v52, -inf }
 0x940   : > { %1730 = vmax.xlane.f32.xlu0 %v1729_v54  ;;  %v1726_v55 = vpop.f32.mrb[30].mxu0 }
 0x941   : > { %v2483_v56 = vpop.f32.mrb[31].mxu0 }
 0x946   : > { %v1831_v57 = vpop.f32.mrb[32].mxu0 }
 0x947   : > { %v2494_v58 = vpop.f32.mrb[33].mxu0  ;;  %v1837_v59 = vsel %vm1227_vm4, %v1831_v57, -inf }
 0x948   : > { %1838 = vmax.xlane.f32.xlu0 %v1837_v59  ;;  %v1834_v60 = vpop.f32.mrb[34].mxu0 }
 0x949   : > { %v2495_v61 = vpop.f32.mrb[35].mxu0 }
 0x952   : > { %v1513_v62 = vpop.xlane.xlu0 %1512 }
 0x953   : > { %v1514_v63 = vsub.f32 %v1505_v42, %v1513_v62 }
 0x955   : > { %v1515_v3 = vmul.f32 1.442695, %v1514_v63 }
 0x957   : > { %2588 = vpow2.f32 %v1515_v3 }
 0x961   : > { %v2589_v0 = vpop.eup %2588 }
 0x962   : > { %v1517_v2 = vsel %vm1227_vm4, %v2589_v0, 0.0 }
 0x963   : > { %1518 = vadd.xlane.f32.xlu1 %v1517_v2 }
 0x974   : > { %1524 = vrot.lane.b32.xlu1 %v2918_v24, %s3110_s29 }
 0x9c5   : > { %v1623_v4 = vpop.xlane.xlu1 %1622 }
 0x9c6   : > { %v1624_v5 = vsub.f32 %v1615_v47, %v1623_v4 }
 0x9c8   : > { %v1625_v6 = vmul.f32 1.442695, %v1624_v5 }
 0x9ca   : > { %2590 = vpow2.f32 %v1625_v6 }
 0x9cd   : > { %v1731_v7 = vpop.xlane.xlu0 %1730 }
 0x9ce   : > { %v1732_v8 = vsub.f32 %v1723_v52, %v1731_v7 }
 0x9d0   : > { %v1733_v9 = vmul.f32 1.442695, %v1732_v8 }
 0x9d2   : > { %2592 = vpow2.f32 %v1733_v9 }
 0x9d4   : > { %v2591_v11 = vpop.eup %2590 }
 0x9d5   : > { %v1839_v12 = vpop.xlane.xlu0 %1838  ;;  %v1627_v10 = vsel %vm1227_vm4, %v2591_v11, 0.0 }
 0x9d6   : > { %v1840_v13 = vsub.f32 %v1831_v57, %v1839_v12  ;;  %1628 = vadd.xlane.f32.xlu0 %v1627_v10 }
 0x9d8   : > { %v1841_v14 = vmul.f32 1.442695, %v1840_v13 }
 0x9da   : > { %2594 = vpow2.f32 %v1841_v14 }
 0x9dc   : > { %v2593_v16 = vpop.eup %2592 }
 0x9dd   : > { %v1735_v17 = vsel %vm1227_vm4, %v2593_v16, 0.0 }
 0x9de   : > { %1736 = vadd.xlane.f32.xlu1 %v1735_v17  ;;  %v2565_v17 = vld [vmem:[%s3076_s16 + $0x8] sm:$0xff]  }
 0x9e4   : > { %v2595_v18 = vpop.eup %2594 }
 0x9e5   : > { %v1843_v19 = vsel %vm1227_vm4, %v2595_v18, 0.0 }
 0x9e6   : > { %1844 = vadd.xlane.f32.xlu0 %v1843_v19 }
 0x9ef   : > { %1741 = vrot.lane.b32.xlu1 %v2918_v24, %s3111_s24 }
 0x9f0   : > { %v1519_v20 = vpop.xlane.xlu1 %1518 }
 0x9f1   : > { %2596 = vrcp.f32 %v1519_v20 }
 0x9f3   : > { %1849 = vrot.lane.b32.xlu1 %v2918_v24, %s3112_s1 }
 0x9f4   : > { %v1525_v21 = vpop.permute.xlu1 %1524 }
 0x9f5   : > { %2461 = vmatpush3.bf16.msra.mxu1 %v1525_v21 }
 0x9f6   : > { %2472 = vmatprep.subr.bf16.mxu1 %v2616_v1 }
 0x9fb   : > { %v2597_v22 = vpop.eup %2596 }
 0x9fc   : > { %v1521_v23 = vmul.f32 %v2597_v22, %v2589_v0  ;;  %1633 = vrot.lane.b32.xlu0 %v2918_v24, %s3113_s23  ;;  %v2298_v0 = vld [vmem:[%s3073_s13] ss:$0 sm:$0xff] }
 0x9fe   : > { %v1522_v25 = vpack.c.bf16 %v1521_v23, %v1521_v23  ;;  %v2302_v23 = vld [vmem:[%s3074_s14] ss:$0 sm:$0xff] }
 0xa00   : > { %2463 = vmatmul.mubr.msk.bf16.vlgmr.msra.gmra.mrb[28].mxu1 %vm1227_vm4, %v1522_v25 }
 0xa01   : > { %2474 = vmatprep.mubr.msk.bf16.mxu1 %vm2617_vm0, %v2616_v1 }
 0xa63   : > { %v1629_v26 = vpop.xlane.xlu0 %1628 }
 0xa64   : > { %2598 = vrcp.f32 %v1629_v26  ;;  %v2303_v26 = vld [vmem:[%s3075_s15] ss:$0 sm:$0xff] }
 0xa6b   : > { %v1737_v27 = vpop.xlane.xlu1 %1736 }
 0xa6c   : > { %2600 = vrcp.f32 %v1737_v27 }
 0xa6e   : > { %v2599_v28 = vpop.eup %2598 }
 0xa6f   : > { %v1631_v30 = vmul.f32 %v2599_v28, %v2591_v11  ;;  %v1742_v33 = vpop.permute.xlu1 %1741 }
 0xa71   : > { %v1632_v32 = vpack.c.bf16 %v1631_v30, %v1631_v30  ;;  %v2568_v30 = vld [vmem:[%s3078_s18 + $0x10] sm:$0xff]  }
 0xa73   : > { %v1845_v29 = vpop.xlane.xlu0 %1844  ;;  %v1850_v37 = vpop.permute.xlu1 %1849 }
 0xa74   : > { %2602 = vrcp.f32 %v1845_v29 }
 0xa76   : > { %v2601_v24 = vpop.eup %2600 }
 0xa77   : > { %v1634_v31 = vpop.permute.xlu0 %1633  ;;  %v1739_v34 = vmul.f32 %v2601_v24, %v2593_v16  ;;  %v2564_v16 = vld [vmem:[%s3076_s16] sm:$0xff]  }
 0xa78   : > { %2473 = vmatpush3.bf16.msra.mxu1 %v1634_v31  ;;  %v2569_v31 = vld [vmem:[%s3078_s18 + $0x18] sm:$0xff]  }
 0xa79   : > { %2484 = vmatprep.subr.bf16.mxu1 %v2616_v1  ;;  %v1740_v35 = vpack.c.bf16 %v1739_v34, %v1739_v34 }
 0xa7b   : > { %2475 = vmatmul.mubr.msk.bf16.vlgmr.msra.gmra.mrb[32].mxu1 %vm1227_vm4, %v1632_v32  ;;  %v2304_v32 = vld [vmem:[%s3077_s17] ss:$0 sm:$0xff] }
 0xa7c   : > { %2485 = vmatpush3.bf16.msra.mxu1 %v1742_v33  ;;  %2486 = vmatprep.mubr.msk.bf16.mxu1 %vm2617_vm0, %v2616_v1 }
 0xa7d   : > { %2496 = vmatprep.subr.bf16.mxu1 %v2616_v1 }
 0xa7e   : > { %v2603_v36 = vpop.eup %2602 }
 0xa7f   : > { %v1847_v38 = vmul.f32 %v2603_v36, %v2595_v18  ;;  %v2567_v18 = vld [vmem:[%s3078_s18 + $0x8] sm:$0xff]  }
 0xa81   : > { %v1848_v39 = vpack.c.bf16 %v1847_v38, %v1847_v38 }
 0xa83   : > { %2487 = vmatmul.mubr.msk.bf16.vlgmr.msra.gmra.mrb[36].mxu1 %vm1227_vm4, %v1740_v35 }
 0xa84   : > { %2497 = vmatpush3.bf16.msra.mxu1 %v1850_v37  ;;  %2498 = vmatprep.mubr.msk.bf16.mxu1 %vm2617_vm0, %v2616_v1 }
 0xa85   : > { %2510 = vmatprep.subr.bf16.mxu1 %v2616_v1 }
 0xa8b   : > { %2499 = vmatmul.mubr.msk.bf16.vlgmr.msra.gmra.mrb[40].mxu1 %vm1227_vm4, %v1848_v39 }
 0xa8c   : > { %2514 = vmatprep.mubr.msk.bf16.mxu1 %vm2617_vm0, %v2616_v1  ;;  %2511 = vmatpush3.bf16.msra.mxu1 %v2564_v16 }
 0xa8d   : > { %2512 = vmatprep.subr.bf16.mxu1 %v2616_v1 }
 0xa90   : > { %2513 = vmatpush3.bf16.msra.mxu1 %v2565_v17 }
 0xad3   : > { %v1564_v40 = vpop.f32.mrb[28].mxu1 }
 0xad4   : > { %v2464_v41 = vpop.f32.mrb[29].mxu1 }
 0xad5   : > { %v1567_v42 = vpop.f32.mrb[30].mxu1 }
 0xad6   : > { %v2465_v43 = vpop.f32.mrb[31].mxu1 }
 0xb4e   : > { %v1673_v45 = vpop.f32.mrb[32].mxu1 }
 0xb4f   : > { %1896 = vrot.lane.b32.xlu0 %v1673_v45, %s3114_s5  ;;  %v2476_v46 = vpop.f32.mrb[33].mxu1 }
 0xb50   : > { %v1676_v47 = vpop.f32.mrb[34].mxu1 }
 0xb51   : > { %v2477_v48 = vpop.f32.mrb[35].mxu1 }
 0xb56   : > { %v1781_v50 = vpop.f32.mrb[36].mxu1 }
 0xb57   : > { %1900 = vrot.lane.b32.xlu1 %v1781_v50, %s3115_s30  ;;  %v2488_v51 = vpop.f32.mrb[37].mxu1 }
 0xb58   : > { %v1784_v52 = vpop.f32.mrb[38].mxu1 }
 0xb59   : > { %v2489_v53 = vpop.f32.mrb[39].mxu1 }
 0xb5e   : > { %v1889_v54 = vpop.f32.mrb[40].mxu1 }
 0xb5f   : > { %1904 = vrot.lane.b32.xlu0 %v1889_v54, %s3116_s25  ;;  %v2500_v55 = vpop.f32.mrb[41].mxu1 }
 0xb60   : > { %v1892_v56 = vpop.f32.mrb[42].mxu1  ;;  %v2314_v55 = vld [vmem:[%s3080_s20] ss:$0 sm:$0xff] }
 0xb61   : > { %v2501_v57 = vpop.f32.mrb[43].mxu1 }
 0xb62   : > { %v2315_v57 = vld [vmem:[%s3081_s21] ss:$0 sm:$0xff] }
 0xbc1   : > { %v1897_v58 = vpop.permute.xlu0 %1896 }
 0xbc2   : > { %v1907_v60 = vsel %vm776_vm2, %v1564_v40, %v1897_v58 }
 0xbc9   : > { %v1901_v59 = vpop.permute.xlu1 %1900 }
 0xbca   : > { %v1908_v61 = vsel %vm1227_vm4, %v1907_v60, %v1901_v59 }
 0xbd1   : > { %v1905_v62 = vpop.permute.xlu0 %1904 }
 0xbd2   : > { %v1909_v63 = vsel %vm1229_vm5, %v1908_v61, %v1905_v62 }
 0xbd3   : > { %v1910_v3 = vpack.c.bf16 %v1909_v63, %v1909_v63 }
 0xbd5   : > { %2507 = vmatmul.mubr.msk.bf16.vlgmr.msra.gmra.mrb[36].mxu0 %vm728_vm1, %v1910_v3 }
 0xbd6   : > { %2526 = vmatprep.mubr.msk.bf16.mxu0 %vm2617_vm0, %v2616_v1 }
 0xca8   : > { %v1971_v2 = vpop.f32.mrb[36].mxu0 }
 0xca9   : > { %v1972_v4 = vadd.f32 %v2298_v0, %v1971_v2  ;;  %v2508_v5 = vpop.f32.mrb[37].mxu0 }
 0xcaa   : > { %v1974_v6 = vpop.f32.mrb[38].mxu0 }
 0xcab   : > { %v2509_v7 = vpop.f32.mrb[39].mxu0  ;;  %v1977_v8 = vadd.f32 %v1972_v4, %v2908_v15  ;;  %v2566_v15 = vld [vmem:[%s3078_s18] sm:$0xff]  }
 0xcac   : > { %2519 = vmatpush3.bf16.msra.mxu0 %v2566_v15 }
 0xcad   : > { %v1978_v9 = vsel %vm728_vm1, %v1977_v8, 0.0  ;;  %2520 = vmatprep.subr.bf16.mxu0 %v2616_v1 }
 0xcae   : > { %1979 = vadd.xlane.f32.xlu1 %v1978_v9 }
 0xcb0   : > { %2521 = vmatpush3.bf16.msra.mxu0 %v2567_v18 }
 0xcb1   : > { %2522 = vmatprep.subr.bf16.mxu0 %v2616_v1 }
 0xcb4   : > { %2523 = vmatpush3.bf16.msra.mxu0 %v2568_v30 }
 0xcb5   : > { %2524 = vmatprep.subr.bf16.mxu0 %v2616_v1  ;;  %v2308_v1 = vld [vmem:[%s3079_s19] ss:$0 sm:$0xff] }
 0xcb8   : > { %2525 = vmatpush3.bf16.msra.mxu0 %v2569_v31 }
 0xd3b   : > { %v1980_v11 = vpop.xlane.xlu1 %1979 }
 0xd3c   : > { %v1981_v12 = vmul.f32 0.03125, %v1980_v11 }
 0xd3e   : > { %v1982_v10 = vsub.f32 %v1977_v8, %v1981_v12 }
 0xd40   : > { %v1983_v13 = vmul.f32 %v1982_v10, %v1982_v10 }
 0xd42   : > { %v1984_v14 = vsel %vm728_vm1, %v1983_v13, 0.0 }
 0xd43   : > { %1985 = vadd.xlane.f32.xlu0 %v1984_v14 }
 0xdd0   : > { %v1986_v19 = vpop.xlane.xlu0 %1985 }
 0xdd1   : > { %v1987_v20 = vmul.f32 0.03125, %v1986_v19 }
 0xdd3   : > { %v1988_v21 = vadd.f32 1e-05, %v1987_v20 }
 0xdd5   : > { %2604 = vrsqrt.f32 %v1988_v21 }
 0xddf   : > { %v2605_v22 = vpop.eup %2604 }
 0xde0   : > { %v1990_v25 = vmul.f32 %v2605_v22, %v1982_v10 }
 0xde2   : > { %v1998_v27 = vmul.f32 %v2302_v23, %v1990_v25 }
 0xde4   : > { %v2006_v28 = vadd.f32 %v2303_v26, %v1998_v27 }
 0xde6   : > { %v2007_v29 = vpack.c.bf16 %v2006_v28, %v2006_v28 }
 0xde8   : > { %2515 = vmatmul.mubr.msk.bf16.vlgmr.msra.gmra.mrb[44].mxu1 %vm728_vm1, %v2007_v29 }
 0xebb   : > { %v2068_v24 = vpop.f32.mrb[44].mxu1 }
 0xebc   : > { %v2069_v33 = vadd.f32 %v2304_v32, %v2068_v24  ;;  %v2516_v34 = vpop.f32.mrb[45].mxu1 }
 0xebd   : > { %v2071_v35 = vpop.f32.mrb[46].mxu1 }
 0xebe   : > { %v2074_v36 = vmax.f32 %v2069_v33, 0.0  ;;  %v2517_v37 = vpop.f32.mrb[47].mxu1 }
 0xec0   : > { %v2075_v38 = vpack.c.bf16 %v2074_v36, %v2074_v36 }
 0xec2   : > { %2527 = vmatmul.mubr.msk.bf16.vlgmr.msra.gmra.mrb[40].mxu0 %vm2115_vm6, %v2075_v38 }
 0xf95   : > { %v2153_v39 = vpop.f32.mrb[40].mxu0 }
 0xf96   : > { %v2154_v40 = vadd.f32 %v2308_v1, %v2153_v39  ;;  %v2528_v41 = vpop.f32.mrb[41].mxu0 }
 0xf97   : > { %v2156_v42 = vpop.f32.mrb[42].mxu0 }
 0xf98   : > { %v2529_v43 = vpop.f32.mrb[43].mxu0  ;;  %v2159_v44 = vadd.f32 %v2154_v40, %v2006_v28 }
 0xf9a   : > { %v2160_v45 = vsel %vm728_vm1, %v2159_v44, 0.0 }
 0xf9b   : > { %2161 = vadd.xlane.f32.xlu0 %v2160_v45 }
0x1028   : > { %v2162_v46 = vpop.xlane.xlu0 %2161 }
0x1029   : > { %v2163_v47 = vmul.f32 0.03125, %v2162_v46 }
0x102b   : > { %v2164_v48 = vsub.f32 %v2159_v44, %v2163_v47 }
0x102d   : > { %v2165_v49 = vmul.f32 %v2164_v48, %v2164_v48 }
0x102f   : > { %v2166_v50 = vsel %vm728_vm1, %v2165_v49, 0.0 }
0x1030   : > { %2167 = vadd.xlane.f32.xlu1 %v2166_v50 }
0x10bd   : > { %v2168_v51 = vpop.xlane.xlu1 %2167 }
0x10be   : > { %v2169_v52 = vmul.f32 0.03125, %v2168_v51 }
0x10c0   : > { %v2170_v53 = vadd.f32 1e-05, %v2169_v52 }
0x10c2   : > { %2606 = vrsqrt.f32 %v2170_v53 }
0x10cc   : > { %v2607_v54 = vpop.eup %2606 }
0x10cd   : > { %v2172_v56 = vmul.f32 %v2607_v54, %v2164_v48 }
0x10cf   : > { %v2180_v58 = vmul.f32 %v2314_v55, %v2172_v56 }
0x10d1   : > { %v2188_v59 = vadd.f32 %v2315_v57, %v2180_v58 }
0x10d3   : > { %2189 = vst.msk [vmem:[%s698_s26] sm:$0xff] %vm728_vm1, %v2188_v59 }
0x10d4 PF: > { %s32_s3 = sadd.s32 1, %s2614_s3  }
0x10d5   : > { %p29_p4 = scmp.ge.s32.totalorder %s32_s3, 4  }
0x10d7   :  { %31 = sbr.rel (!%p29_p4) target bundleno = 8 (0x8), region = 141 }

</bundles_post_ra>
